<compile_context>
chip_gen: v7x
topology: tpu7x:2x2x1
jax: 0.10.0
libtpu: 0.0.40
codegen_flags: <defaults>
</compile_context>

<pallas_src>
import functools

import jax
import jax.numpy as jnp
from jax import lax
from jax.experimental import pallas as pl
from jax.experimental.pallas import tpu as pltpu


def _silu(v):
    return v * (1.0 / (1.0 + jnp.exp(-v)))


# ---------------------------------------------------------------------------
# Fused Pallas kernel: one grid step == one image, channels-major (C, H*W)
# ---------------------------------------------------------------------------
def _esp_fused_kernel(x_ref, w1_ref, b1_ref, wm_ref, bm_ref, w2_ref, b2_ref,
                      mask_ref, o_ref, *, num_convs, width, hw):
    x = x_ref[0]                                                     # (C1, HW)

    # cv1: 1x1 conv (+ folded BN) + SiLU
    y = jnp.dot(w1_ref[...], x, preferred_element_type=jnp.float32) + b1_ref[...]
    y = _silu(y)                                                     # (c, HW)

    # Bottlenecks: num_convs consecutive 3x3 convs (shortcut=False, e=1.0).
    # Tap (dy, dx) reads the neighbour at flat-pixel offset dy*W + dx; the circular
    # wrap is handled by slicing a doubled copy, and out-of-image neighbours are
    # zeroed with the precomputed per-tap masks (exact zero padding semantics).
    offsets = [dy * width + dx for dy in (-1, 0, 1) for dx in (-1, 0, 1)]
    for layer in range(num_convs):
        ydouble = jnp.concatenate([y, y], axis=1)                    # (c, 2*HW), lane-aligned
        acc = None
        for t, off in enumerate(offsets):
            o = off % hw
            src = ydouble[:, o:o + hw] * mask_ref[t]                 # (c, HW), masked neighbour
            contrib = jnp.dot(wm_ref[layer * 9 + t], src,
                              preferred_element_type=jnp.float32)
            acc = contrib if acc is None else acc + contrib
        y = _silu(acc + bm_ref[layer])

    # cv2: 1x1 conv (+ folded BN) + SiLU  -> lane-dense (C2, HW) store
    out = jnp.dot(w2_ref[...], y, preferred_element_type=jnp.float32) + b2_ref[...]
    o_ref[0] = _silu(out).astype(o_ref.dtype)


# ---------------------------------------------------------------------------
# Wrapper (glue: reshapes + tap-mask constants only)
# ---------------------------------------------------------------------------
def _make_tap_masks(h, w):
    """(9, 1, H*W) f32 masks: 1 where the (dy, dx) neighbour of a pixel is in-image."""
    hw = h * w
    p = jnp.arange(hw, dtype=jnp.int32)
    row, col = p // w, p % w
    masks = []
    for dy in (-1, 0, 1):
        row_ok = jnp.logical_and(row + dy >= 0, row + dy < h)
        for dx in (-1, 0, 1):
            col_ok = jnp.logical_and(col + dx >= 0, col + dx < w)
            masks.append(jnp.logical_and(row_ok, col_ok).astype(jnp.float32))
    return jnp.stack(masks, axis=0).reshape(9, 1, hw)


def esp_serial_lite_forward(x_nchw, params):
    n, c1, h, w = x_nchw.shape
    hw = h * w
    w1, b1 = params["w1"], params["b1"]
    wm, bm = params["wm"], params["bm"]
    w2, b2 = params["w2"], params["b2"]
    c_hid = w1.shape[0]
    c2 = w2.shape[0]
    num_convs = bm.shape[0]

    masks = _make_tap_masks(h, w)
    x3 = x_nchw.reshape(n, c1, hw).astype(jnp.float32)

    kernel = functools.partial(_esp_fused_kernel,
                               num_convs=num_convs, width=w, hw=hw)

    out = pl.pallas_call(
        kernel,
        out_shape=jax.ShapeDtypeStruct((n, c2, hw), jnp.float32),
        grid_spec=pltpu.PrefetchScalarGridSpec(
            num_scalar_prefetch=0,
            grid=(n,),
            in_specs=[
                pl.BlockSpec((1, c1, hw), lambda i: (i, 0, 0)),                    # x (one image)
                pl.BlockSpec((c_hid, c1), lambda i: (0, 0)),                       # cv1 weight
                pl.BlockSpec((c_hid, 1), lambda i: (0, 0)),                        # cv1 bias
                pl.BlockSpec((num_convs * 9, c_hid, c_hid), lambda i: (0, 0, 0)),  # 3x3 tap weights
                pl.BlockSpec((num_convs, c_hid, 1), lambda i: (0, 0, 0)),          # 3x3 biases
                pl.BlockSpec((c2, c_hid), lambda i: (0, 0)),                       # cv2 weight
                pl.BlockSpec((c2, 1), lambda i: (0, 0)),                           # cv2 bias
                pl.BlockSpec((9, 1, hw), lambda i: (0, 0, 0)),                     # tap masks
            ],
            out_specs=pl.BlockSpec((1, c2, hw), lambda i: (i, 0, 0)),
        ),
        compiler_params=pltpu.CompilerParams(
            dimension_semantics=("parallel",),
        ),
    )(x3, w1, b1, wm, bm, w2, b2, masks)
    return out.reshape(n, c2, h, w)


# ---------------------------------------------------------------------------
# Deterministic parameters (Conv2d weight + BN stats, BN folded, eval mode)
# ---------------------------------------------------------------------------
def make_conv_params(key, cin, cout, k):
    k1, k2, k3, k4, k5 = jax.random.split(key, 5)
    wgt = jax.random.normal(k1, (cout, cin, k, k), jnp.float32) / jnp.sqrt(cin * k * k)
    gamma = jax.random.uniform(k2, (cout,), jnp.float32, 0.5, 1.5)
    beta = jax.random.normal(k3, (cout,), jnp.float32) * 0.1
    rmean = jax.random.normal(k4, (cout,), jnp.float32) * 0.1
    rvar = jax.random.uniform(k5, (cout,), jnp.float32, 0.5, 1.5)
    eps = 1e-3                                # Ultralytics Conv -> BatchNorm2d(eps=0.001)
    scale = gamma / jnp.sqrt(rvar + eps)
    w_fold = wgt * scale[:, None, None, None]
    b_fold = beta - rmean * scale
    return w_fold, b_fold                     # OIHW folded weight, bias


def prep_kernel_params(raw):
    """Re-layout folded weights for the fused channels-major kernel."""
    w1f, b1f = raw["cv1"]
    w2f, b2f = raw["cv2"]
    wm_list, bm_list = [], []
    for blk in raw["m"]:
        for wf, bf in blk:                                   # Bottleneck.cv1 then .cv2
            cout, cin = wf.shape[0], wf.shape[1]
            wm_list.append(jnp.transpose(wf, (2, 3, 0, 1)).reshape(9, cout, cin))
            bm_list.append(bf.reshape(cout, 1))
    return {
        "w1": w1f[:, :, 0, 0], "b1": b1f.reshape(-1, 1),
        "wm": jnp.concatenate(wm_list, axis=0),              # (2n*9, c, c), tap-major per layer
        "bm": jnp.stack(bm_list, axis=0),                    # (2n, c, 1)
        "w2": w2f[:, :, 0, 0], "b2": b2f.reshape(-1, 1),
    }


# ---------------------------------------------------------------------------
# Pure-JAX reference (lax conv on the same folded weights)
# ---------------------------------------------------------------------------
def _ref_conv_bn_silu(x_nchw, w_oihw, b):
    y = lax.conv_general_dilated(
        x_nchw, w_oihw, window_strides=(1, 1), padding="SAME",
        dimension_numbers=("NCHW", "OIHW", "NCHW"))
    y = y + b.reshape(1, -1, 1, 1)
    return y * jax.nn.sigmoid(y)


def esp_serial_lite_reference(x_nchw, raw):
    y = _ref_conv_bn_silu(x_nchw, *raw["cv1"])
    for (wa, ba), (wb, bb) in raw["m"]:
        y = _ref_conv_bn_silu(y, wa, ba)
        y = _ref_conv_bn_silu(y, wb, bb)
    return _ref_conv_bn_silu(y, *raw["cv2"])


# ---------------------------------------------------------------------------
if __name__ == "__main__":
    key = jax.random.PRNGKey(0)
    c1, c2, n_blocks, e = 4, 8, 1, 0.5
    c_hidden = int(c2 * e)                        # = 4
    N, H, W = 2, 16, 16

    keys = jax.random.split(key, 2 + 2 * n_blocks + 1)
    raw = {
        "cv1": make_conv_params(keys[0], c1, c_hidden, 1),
        "cv2": make_conv_params(keys[1], c_hidden, c2, 1),
        "m": [
            (make_conv_params(keys[2 + 2 * i], c_hidden, c_hidden, 3),
             make_conv_params(keys[3 + 2 * i], c_hidden, c_hidden, 3))
            for i in range(n_blocks)
        ],
    }
    params = prep_kernel_params(raw)
    x = jax.random.normal(keys[-1], (N, c1, H, W), jnp.float32)

    out = jax.block_until_ready(esp_serial_lite_forward(x, params))
    ref = jax.block_until_ready(esp_serial_lite_reference(x, raw))

    assert out.shape == (N, c2, H, W), out.shape
    max_err = float(jnp.max(jnp.abs(out - ref)))
    assert jnp.allclose(out, ref, atol=1e-4, rtol=1e-4), max_err
    print("KERNEL_OK")
</pallas_src>

<mosaic_0001>
module attributes {stable_mosaic.version = 11 : i64} {
  func.func @_esp_fused_kernel(%arg0: i32, %arg1: memref<1x4x256xf32, #tpu.memory_space<vmem>>, %arg2: memref<4x4xf32, #tpu.memory_space<vmem>>, %arg3: memref<4x1xf32, #tpu.memory_space<vmem>>, %arg4: memref<18x4x4xf32, #tpu.memory_space<vmem>>, %arg5: memref<2x4x1xf32, #tpu.memory_space<vmem>>, %arg6: memref<8x4xf32, #tpu.memory_space<vmem>>, %arg7: memref<8x1xf32, #tpu.memory_space<vmem>>, %arg8: memref<9x1x256xf32, #tpu.memory_space<vmem>>, %arg9: memref<1x8x256xf32, #tpu.memory_space<vmem>>) attributes {dimension_semantics = [#tpu.dimension_semantics<parallel>], iteration_bounds = array<i64: 2>, scalar_prefetch = 0 : i64, scratch_operands = 0 : i64, tpu.core_type = #tpu.core_type<tc>, window_params = [{transform_indices = @transform_0, window_bounds = array<i64: 1, 4, 256>}, {pipeline_mode = #tpu.pipeline_mode<synchronous>, transform_indices = @transform_1, window_bounds = array<i64: 4, 4>}, {pipeline_mode = #tpu.pipeline_mode<synchronous>, transform_indices = @transform_2, window_bounds = array<i64: 4, 1>}, {pipeline_mode = #tpu.pipeline_mode<synchronous>, transform_indices = @transform_3, window_bounds = array<i64: 18, 4, 4>}, {pipeline_mode = #tpu.pipeline_mode<synchronous>, transform_indices = @transform_4, window_bounds = array<i64: 2, 4, 1>}, {pipeline_mode = #tpu.pipeline_mode<synchronous>, transform_indices = @transform_5, window_bounds = array<i64: 8, 4>}, {pipeline_mode = #tpu.pipeline_mode<synchronous>, transform_indices = @transform_6, window_bounds = array<i64: 8, 1>}, {pipeline_mode = #tpu.pipeline_mode<synchronous>, transform_indices = @transform_7, window_bounds = array<i64: 9, 1, 256>}, {transform_indices = @transform_8, window_bounds = array<i64: 1, 8, 256>}]} {
    %c0 = arith.constant 0 : index
    %c0_0 = arith.constant 0 : index
    %c0_1 = arith.constant 0 : index
    %0 = vector.load %arg1[%c0, %c0_0, %c0_1] : memref<1x4x256xf32, #tpu.memory_space<vmem>>, vector<1x4x256xf32>
    %1 = vector.shape_cast %0 : vector<1x4x256xf32> to vector<4x256xf32>
    %c0_2 = arith.constant 0 : index
    %c0_3 = arith.constant 0 : index
    %2 = vector.load %arg2[%c0_2, %c0_3] : memref<4x4xf32, #tpu.memory_space<vmem>>, vector<4x4xf32>
    %cst = arith.constant dense<0.000000e+00> : vector<4x256xf32>
    %3 = tpu.matmul %2, %1, %cst {dimension_numbers = #tpu.dot_dimension_numbers<[1], [0], [0], [1], [0, 0, 1, 1], [], []>} : vector<4x4xf32>, vector<4x256xf32>, vector<4x256xf32> -> vector<4x256xf32>
    %c0_4 = arith.constant 0 : index
    %c0_5 = arith.constant 0 : index
    %4 = vector.load %arg3[%c0_4, %c0_5] : memref<4x1xf32, #tpu.memory_space<vmem>>, vector<4x1xf32>
    %5 = vector.broadcast %4 : vector<4x1xf32> to vector<4x256xf32>
    %6 = arith.addf %3, %5 : vector<4x256xf32>
    %cst_6 = arith.constant 0.000000e+00 : f32
    %7 = vector.broadcast %cst_6 : f32 to vector<4x256xf32>
    %8 = arith.subf %7, %6 : vector<4x256xf32>
    %9 = math.exp %8 : vector<4x256xf32>
    %cst_7 = arith.constant 1.000000e+00 : f32
    %10 = vector.broadcast %cst_7 : f32 to vector<4x256xf32>
    %11 = arith.addf %10, %9 : vector<4x256xf32>
    %cst_8 = arith.constant 1.000000e+00 : f32
    %12 = vector.broadcast %cst_8 : f32 to vector<4x256xf32>
    %13 = arith.divf %12, %11 : vector<4x256xf32>
    %14 = arith.mulf %6, %13 : vector<4x256xf32>
    %15 = tpu.concatenate %14, %14 in 1 : vector<4x256xf32>, vector<4x256xf32> -> vector<4x512xf32>
    %16 = vector.extract_strided_slice %15 {offsets = [0, 239], sizes = [4, 256], strides = [1, 1]} : vector<4x512xf32> to vector<4x256xf32>
    %c0_9 = arith.constant 0 : index
    %c0_10 = arith.constant 0 : index
    %c0_11 = arith.constant 0 : index
    %17 = vector.load %arg8[%c0_9, %c0_10, %c0_11] : memref<9x1x256xf32, #tpu.memory_space<vmem>>, vector<1x1x256xf32>
    %18 = vector.shape_cast %17 : vector<1x1x256xf32> to vector<1x256xf32>
    %19 = vector.broadcast %18 : vector<1x256xf32> to vector<4x256xf32>
    %20 = arith.mulf %16, %19 : vector<4x256xf32>
    %c0_12 = arith.constant 0 : index
    %c0_13 = arith.constant 0 : index
    %c0_14 = arith.constant 0 : index
    %21 = vector.load %arg4[%c0_12, %c0_13, %c0_14] : memref<18x4x4xf32, #tpu.memory_space<vmem>>, vector<1x4x4xf32>
    %22 = vector.shape_cast %21 : vector<1x4x4xf32> to vector<4x4xf32>
    %cst_15 = arith.constant dense<0.000000e+00> : vector<4x256xf32>
    %23 = tpu.matmul %22, %20, %cst_15 {dimension_numbers = #tpu.dot_dimension_numbers<[1], [0], [0], [1], [0, 0, 1, 1], [], []>} : vector<4x4xf32>, vector<4x256xf32>, vector<4x256xf32> -> vector<4x256xf32>
    %24 = vector.extract_strided_slice %15 {offsets = [0, 240], sizes = [4, 256], strides = [1, 1]} : vector<4x512xf32> to vector<4x256xf32>
    %c1 = arith.constant 1 : index
    %c0_16 = arith.constant 0 : index
    %c0_17 = arith.constant 0 : index
    %25 = vector.load %arg8[%c1, %c0_16, %c0_17] : memref<9x1x256xf32, #tpu.memory_space<vmem>>, vector<1x1x256xf32>
    %26 = vector.shape_cast %25 : vector<1x1x256xf32> to vector<1x256xf32>
    %27 = vector.broadcast %26 : vector<1x256xf32> to vector<4x256xf32>
    %28 = arith.mulf %24, %27 : vector<4x256xf32>
    %c1_18 = arith.constant 1 : index
    %c0_19 = arith.constant 0 : index
    %c0_20 = arith.constant 0 : index
    %29 = vector.load %arg4[%c1_18, %c0_19, %c0_20] : memref<18x4x4xf32, #tpu.memory_space<vmem>>, vector<1x4x4xf32>
    %30 = vector.shape_cast %29 : vector<1x4x4xf32> to vector<4x4xf32>
    %cst_21 = arith.constant dense<0.000000e+00> : vector<4x256xf32>
    %31 = tpu.matmul %30, %28, %cst_21 {dimension_numbers = #tpu.dot_dimension_numbers<[1], [0], [0], [1], [0, 0, 1, 1], [], []>} : vector<4x4xf32>, vector<4x256xf32>, vector<4x256xf32> -> vector<4x256xf32>
    %32 = arith.addf %23, %31 : vector<4x256xf32>
    %33 = vector.extract_strided_slice %15 {offsets = [0, 241], sizes = [4, 256], strides = [1, 1]} : vector<4x512xf32> to vector<4x256xf32>
    %c2 = arith.constant 2 : index
    %c0_22 = arith.constant 0 : index
    %c0_23 = arith.constant 0 : index
    %34 = vector.load %arg8[%c2, %c0_22, %c0_23] : memref<9x1x256xf32, #tpu.memory_space<vmem>>, vector<1x1x256xf32>
    %35 = vector.shape_cast %34 : vector<1x1x256xf32> to vector<1x256xf32>
    %36 = vector.broadcast %35 : vector<1x256xf32> to vector<4x256xf32>
    %37 = arith.mulf %33, %36 : vector<4x256xf32>
    %c2_24 = arith.constant 2 : index
    %c0_25 = arith.constant 0 : index
    %c0_26 = arith.constant 0 : index
    %38 = vector.load %arg4[%c2_24, %c0_25, %c0_26] : memref<18x4x4xf32, #tpu.memory_space<vmem>>, vector<1x4x4xf32>
    %39 = vector.shape_cast %38 : vector<1x4x4xf32> to vector<4x4xf32>
    %cst_27 = arith.constant dense<0.000000e+00> : vector<4x256xf32>
    %40 = tpu.matmul %39, %37, %cst_27 {dimension_numbers = #tpu.dot_dimension_numbers<[1], [0], [0], [1], [0, 0, 1, 1], [], []>} : vector<4x4xf32>, vector<4x256xf32>, vector<4x256xf32> -> vector<4x256xf32>
    %41 = arith.addf %32, %40 : vector<4x256xf32>
    %42 = vector.extract_strided_slice %15 {offsets = [0, 255], sizes = [4, 256], strides = [1, 1]} : vector<4x512xf32> to vector<4x256xf32>
    %c3 = arith.constant 3 : index
    %c0_28 = arith.constant 0 : index
    %c0_29 = arith.constant 0 : index
    %43 = vector.load %arg8[%c3, %c0_28, %c0_29] : memref<9x1x256xf32, #tpu.memory_space<vmem>>, vector<1x1x256xf32>
    %44 = vector.shape_cast %43 : vector<1x1x256xf32> to vector<1x256xf32>
    %45 = vector.broadcast %44 : vector<1x256xf32> to vector<4x256xf32>
    %46 = arith.mulf %42, %45 : vector<4x256xf32>
    %c3_30 = arith.constant 3 : index
    %c0_31 = arith.constant 0 : index
    %c0_32 = arith.constant 0 : index
    %47 = vector.load %arg4[%c3_30, %c0_31, %c0_32] : memref<18x4x4xf32, #tpu.memory_space<vmem>>, vector<1x4x4xf32>
    %48 = vector.shape_cast %47 : vector<1x4x4xf32> to vector<4x4xf32>
    %cst_33 = arith.constant dense<0.000000e+00> : vector<4x256xf32>
    %49 = tpu.matmul %48, %46, %cst_33 {dimension_numbers = #tpu.dot_dimension_numbers<[1], [0], [0], [1], [0, 0, 1, 1], [], []>} : vector<4x4xf32>, vector<4x256xf32>, vector<4x256xf32> -> vector<4x256xf32>
    %50 = arith.addf %41, %49 : vector<4x256xf32>
    %51 = vector.extract_strided_slice %15 {offsets = [0, 0], sizes = [4, 256], strides = [1, 1]} : vector<4x512xf32> to vector<4x256xf32>
    %c4 = arith.constant 4 : index
    %c0_34 = arith.constant 0 : index
    %c0_35 = arith.constant 0 : index
    %52 = vector.load %arg8[%c4, %c0_34, %c0_35] : memref<9x1x256xf32, #tpu.memory_space<vmem>>, vector<1x1x256xf32>
    %53 = vector.shape_cast %52 : vector<1x1x256xf32> to vector<1x256xf32>
    %54 = vector.broadcast %53 : vector<1x256xf32> to vector<4x256xf32>
    %55 = arith.mulf %51, %54 : vector<4x256xf32>
    %c4_36 = arith.constant 4 : index
    %c0_37 = arith.constant 0 : index
    %c0_38 = arith.constant 0 : index
    %56 = vector.load %arg4[%c4_36, %c0_37, %c0_38] : memref<18x4x4xf32, #tpu.memory_space<vmem>>, vector<1x4x4xf32>
    %57 = vector.shape_cast %56 : vector<1x4x4xf32> to vector<4x4xf32>
    %cst_39 = arith.constant dense<0.000000e+00> : vector<4x256xf32>
    %58 = tpu.matmul %57, %55, %cst_39 {dimension_numbers = #tpu.dot_dimension_numbers<[1], [0], [0], [1], [0, 0, 1, 1], [], []>} : vector<4x4xf32>, vector<4x256xf32>, vector<4x256xf32> -> vector<4x256xf32>
    %59 = arith.addf %50, %58 : vector<4x256xf32>
    %60 = vector.extract_strided_slice %15 {offsets = [0, 1], sizes = [4, 256], strides = [1, 1]} : vector<4x512xf32> to vector<4x256xf32>
    %c5 = arith.constant 5 : index
    %c0_40 = arith.constant 0 : index
    %c0_41 = arith.constant 0 : index
    %61 = vector.load %arg8[%c5, %c0_40, %c0_41] : memref<9x1x256xf32, #tpu.memory_space<vmem>>, vector<1x1x256xf32>
    %62 = vector.shape_cast %61 : vector<1x1x256xf32> to vector<1x256xf32>
    %63 = vector.broadcast %62 : vector<1x256xf32> to vector<4x256xf32>
    %64 = arith.mulf %60, %63 : vector<4x256xf32>
    %c5_42 = arith.constant 5 : index
    %c0_43 = arith.constant 0 : index
    %c0_44 = arith.constant 0 : index
    %65 = vector.load %arg4[%c5_42, %c0_43, %c0_44] : memref<18x4x4xf32, #tpu.memory_space<vmem>>, vector<1x4x4xf32>
    %66 = vector.shape_cast %65 : vector<1x4x4xf32> to vector<4x4xf32>
    %cst_45 = arith.constant dense<0.000000e+00> : vector<4x256xf32>
    %67 = tpu.matmul %66, %64, %cst_45 {dimension_numbers = #tpu.dot_dimension_numbers<[1], [0], [0], [1], [0, 0, 1, 1], [], []>} : vector<4x4xf32>, vector<4x256xf32>, vector<4x256xf32> -> vector<4x256xf32>
    %68 = arith.addf %59, %67 : vector<4x256xf32>
    %69 = vector.extract_strided_slice %15 {offsets = [0, 15], sizes = [4, 256], strides = [1, 1]} : vector<4x512xf32> to vector<4x256xf32>
    %c6 = arith.constant 6 : index
    %c0_46 = arith.constant 0 : index
    %c0_47 = arith.constant 0 : index
    %70 = vector.load %arg8[%c6, %c0_46, %c0_47] : memref<9x1x256xf32, #tpu.memory_space<vmem>>, vector<1x1x256xf32>
    %71 = vector.shape_cast %70 : vector<1x1x256xf32> to vector<1x256xf32>
    %72 = vector.broadcast %71 : vector<1x256xf32> to vector<4x256xf32>
    %73 = arith.mulf %69, %72 : vector<4x256xf32>
    %c6_48 = arith.constant 6 : index
    %c0_49 = arith.constant 0 : index
    %c0_50 = arith.constant 0 : index
    %74 = vector.load %arg4[%c6_48, %c0_49, %c0_50] : memref<18x4x4xf32, #tpu.memory_space<vmem>>, vector<1x4x4xf32>
    %75 = vector.shape_cast %74 : vector<1x4x4xf32> to vector<4x4xf32>
    %cst_51 = arith.constant dense<0.000000e+00> : vector<4x256xf32>
    %76 = tpu.matmul %75, %73, %cst_51 {dimension_numbers = #tpu.dot_dimension_numbers<[1], [0], [0], [1], [0, 0, 1, 1], [], []>} : vector<4x4xf32>, vector<4x256xf32>, vector<4x256xf32> -> vector<4x256xf32>
    %77 = arith.addf %68, %76 : vector<4x256xf32>
    %78 = vector.extract_strided_slice %15 {offsets = [0, 16], sizes = [4, 256], strides = [1, 1]} : vector<4x512xf32> to vector<4x256xf32>
    %c7 = arith.constant 7 : index
    %c0_52 = arith.constant 0 : index
    %c0_53 = arith.constant 0 : index
    %79 = vector.load %arg8[%c7, %c0_52, %c0_53] : memref<9x1x256xf32, #tpu.memory_space<vmem>>, vector<1x1x256xf32>
    %80 = vector.shape_cast %79 : vector<1x1x256xf32> to vector<1x256xf32>
    %81 = vector.broadcast %80 : vector<1x256xf32> to vector<4x256xf32>
    %82 = arith.mulf %78, %81 : vector<4x256xf32>
    %c7_54 = arith.constant 7 : index
    %c0_55 = arith.constant 0 : index
    %c0_56 = arith.constant 0 : index
    %83 = vector.load %arg4[%c7_54, %c0_55, %c0_56] : memref<18x4x4xf32, #tpu.memory_space<vmem>>, vector<1x4x4xf32>
    %84 = vector.shape_cast %83 : vector<1x4x4xf32> to vector<4x4xf32>
    %cst_57 = arith.constant dense<0.000000e+00> : vector<4x256xf32>
    %85 = tpu.matmul %84, %82, %cst_57 {dimension_numbers = #tpu.dot_dimension_numbers<[1], [0], [0], [1], [0, 0, 1, 1], [], []>} : vector<4x4xf32>, vector<4x256xf32>, vector<4x256xf32> -> vector<4x256xf32>
    %86 = arith.addf %77, %85 : vector<4x256xf32>
    %87 = vector.extract_strided_slice %15 {offsets = [0, 17], sizes = [4, 256], strides = [1, 1]} : vector<4x512xf32> to vector<4x256xf32>
    %c8 = arith.constant 8 : index
    %c0_58 = arith.constant 0 : index
    %c0_59 = arith.constant 0 : index
    %88 = vector.load %arg8[%c8, %c0_58, %c0_59] : memref<9x1x256xf32, #tpu.memory_space<vmem>>, vector<1x1x256xf32>
    %89 = vector.shape_cast %88 : vector<1x1x256xf32> to vector<1x256xf32>
    %90 = vector.broadcast %89 : vector<1x256xf32> to vector<4x256xf32>
    %91 = arith.mulf %87, %90 : vector<4x256xf32>
    %c8_60 = arith.constant 8 : index
    %c0_61 = arith.constant 0 : index
    %c0_62 = arith.constant 0 : index
    %92 = vector.load %arg4[%c8_60, %c0_61, %c0_62] : memref<18x4x4xf32, #tpu.memory_space<vmem>>, vector<1x4x4xf32>
    %93 = vector.shape_cast %92 : vector<1x4x4xf32> to vector<4x4xf32>
    %cst_63 = arith.constant dense<0.000000e+00> : vector<4x256xf32>
    %94 = tpu.matmul %93, %91, %cst_63 {dimension_numbers = #tpu.dot_dimension_numbers<[1], [0], [0], [1], [0, 0, 1, 1], [], []>} : vector<4x4xf32>, vector<4x256xf32>, vector<4x256xf32> -> vector<4x256xf32>
    %95 = arith.addf %86, %94 : vector<4x256xf32>
    %c0_64 = arith.constant 0 : index
    %c0_65 = arith.constant 0 : index
    %c0_66 = arith.constant 0 : index
    %96 = vector.load %arg5[%c0_64, %c0_65, %c0_66] : memref<2x4x1xf32, #tpu.memory_space<vmem>>, vector<1x4x1xf32>
    %97 = vector.shape_cast %96 : vector<1x4x1xf32> to vector<4x1xf32>
    %98 = vector.broadcast %97 : vector<4x1xf32> to vector<4x256xf32>
    %99 = arith.addf %95, %98 : vector<4x256xf32>
    %cst_67 = arith.constant 0.000000e+00 : f32
    %100 = vector.broadcast %cst_67 : f32 to vector<4x256xf32>
    %101 = arith.subf %100, %99 : vector<4x256xf32>
    %102 = math.exp %101 : vector<4x256xf32>
    %cst_68 = arith.constant 1.000000e+00 : f32
    %103 = vector.broadcast %cst_68 : f32 to vector<4x256xf32>
    %104 = arith.addf %103, %102 : vector<4x256xf32>
    %cst_69 = arith.constant 1.000000e+00 : f32
    %105 = vector.broadcast %cst_69 : f32 to vector<4x256xf32>
    %106 = arith.divf %105, %104 : vector<4x256xf32>
    %107 = arith.mulf %99, %106 : vector<4x256xf32>
    %108 = tpu.concatenate %107, %107 in 1 : vector<4x256xf32>, vector<4x256xf32> -> vector<4x512xf32>
    %109 = vector.extract_strided_slice %108 {offsets = [0, 239], sizes = [4, 256], strides = [1, 1]} : vector<4x512xf32> to vector<4x256xf32>
    %c0_70 = arith.constant 0 : index
    %c0_71 = arith.constant 0 : index
    %c0_72 = arith.constant 0 : index
    %110 = vector.load %arg8[%c0_70, %c0_71, %c0_72] : memref<9x1x256xf32, #tpu.memory_space<vmem>>, vector<1x1x256xf32>
    %111 = vector.shape_cast %110 : vector<1x1x256xf32> to vector<1x256xf32>
    %112 = vector.broadcast %111 : vector<1x256xf32> to vector<4x256xf32>
    %113 = arith.mulf %109, %112 : vector<4x256xf32>
    %c9 = arith.constant 9 : index
    %c0_73 = arith.constant 0 : index
    %c0_74 = arith.constant 0 : index
    %114 = vector.load %arg4[%c9, %c0_73, %c0_74] : memref<18x4x4xf32, #tpu.memory_space<vmem>>, vector<1x4x4xf32>
    %115 = vector.shape_cast %114 : vector<1x4x4xf32> to vector<4x4xf32>
    %cst_75 = arith.constant dense<0.000000e+00> : vector<4x256xf32>
    %116 = tpu.matmul %115, %113, %cst_75 {dimension_numbers = #tpu.dot_dimension_numbers<[1], [0], [0], [1], [0, 0, 1, 1], [], []>} : vector<4x4xf32>, vector<4x256xf32>, vector<4x256xf32> -> vector<4x256xf32>
    %117 = vector.extract_strided_slice %108 {offsets = [0, 240], sizes = [4, 256], strides = [1, 1]} : vector<4x512xf32> to vector<4x256xf32>
    %c1_76 = arith.constant 1 : index
    %c0_77 = arith.constant 0 : index
    %c0_78 = arith.constant 0 : index
    %118 = vector.load %arg8[%c1_76, %c0_77, %c0_78] : memref<9x1x256xf32, #tpu.memory_space<vmem>>, vector<1x1x256xf32>
    %119 = vector.shape_cast %118 : vector<1x1x256xf32> to vector<1x256xf32>
    %120 = vector.broadcast %119 : vector<1x256xf32> to vector<4x256xf32>
    %121 = arith.mulf %117, %120 : vector<4x256xf32>
    %c10 = arith.constant 10 : index
    %c0_79 = arith.constant 0 : index
    %c0_80 = arith.constant 0 : index
    %122 = vector.load %arg4[%c10, %c0_79, %c0_80] : memref<18x4x4xf32, #tpu.memory_space<vmem>>, vector<1x4x4xf32>
    %123 = vector.shape_cast %122 : vector<1x4x4xf32> to vector<4x4xf32>
    %cst_81 = arith.constant dense<0.000000e+00> : vector<4x256xf32>
    %124 = tpu.matmul %123, %121, %cst_81 {dimension_numbers = #tpu.dot_dimension_numbers<[1], [0], [0], [1], [0, 0, 1, 1], [], []>} : vector<4x4xf32>, vector<4x256xf32>, vector<4x256xf32> -> vector<4x256xf32>
    %125 = arith.addf %116, %124 : vector<4x256xf32>
    %126 = vector.extract_strided_slice %108 {offsets = [0, 241], sizes = [4, 256], strides = [1, 1]} : vector<4x512xf32> to vector<4x256xf32>
    %c2_82 = arith.constant 2 : index
    %c0_83 = arith.constant 0 : index
    %c0_84 = arith.constant 0 : index
    %127 = vector.load %arg8[%c2_82, %c0_83, %c0_84] : memref<9x1x256xf32, #tpu.memory_space<vmem>>, vector<1x1x256xf32>
    %128 = vector.shape_cast %127 : vector<1x1x256xf32> to vector<1x256xf32>
    %129 = vector.broadcast %128 : vector<1x256xf32> to vector<4x256xf32>
    %130 = arith.mulf %126, %129 : vector<4x256xf32>
    %c11 = arith.constant 11 : index
    %c0_85 = arith.constant 0 : index
    %c0_86 = arith.constant 0 : index
    %131 = vector.load %arg4[%c11, %c0_85, %c0_86] : memref<18x4x4xf32, #tpu.memory_space<vmem>>, vector<1x4x4xf32>
    %132 = vector.shape_cast %131 : vector<1x4x4xf32> to vector<4x4xf32>
    %cst_87 = arith.constant dense<0.000000e+00> : vector<4x256xf32>
    %133 = tpu.matmul %132, %130, %cst_87 {dimension_numbers = #tpu.dot_dimension_numbers<[1], [0], [0], [1], [0, 0, 1, 1], [], []>} : vector<4x4xf32>, vector<4x256xf32>, vector<4x256xf32> -> vector<4x256xf32>
    %134 = arith.addf %125, %133 : vector<4x256xf32>
    %135 = vector.extract_strided_slice %108 {offsets = [0, 255], sizes = [4, 256], strides = [1, 1]} : vector<4x512xf32> to vector<4x256xf32>
    %c3_88 = arith.constant 3 : index
    %c0_89 = arith.constant 0 : index
    %c0_90 = arith.constant 0 : index
    %136 = vector.load %arg8[%c3_88, %c0_89, %c0_90] : memref<9x1x256xf32, #tpu.memory_space<vmem>>, vector<1x1x256xf32>
    %137 = vector.shape_cast %136 : vector<1x1x256xf32> to vector<1x256xf32>
    %138 = vector.broadcast %137 : vector<1x256xf32> to vector<4x256xf32>
    %139 = arith.mulf %135, %138 : vector<4x256xf32>
    %c12 = arith.constant 12 : index
    %c0_91 = arith.constant 0 : index
    %c0_92 = arith.constant 0 : index
    %140 = vector.load %arg4[%c12, %c0_91, %c0_92] : memref<18x4x4xf32, #tpu.memory_space<vmem>>, vector<1x4x4xf32>
    %141 = vector.shape_cast %140 : vector<1x4x4xf32> to vector<4x4xf32>
    %cst_93 = arith.constant dense<0.000000e+00> : vector<4x256xf32>
    %142 = tpu.matmul %141, %139, %cst_93 {dimension_numbers = #tpu.dot_dimension_numbers<[1], [0], [0], [1], [0, 0, 1, 1], [], []>} : vector<4x4xf32>, vector<4x256xf32>, vector<4x256xf32> -> vector<4x256xf32>
    %143 = arith.addf %134, %142 : vector<4x256xf32>
    %144 = vector.extract_strided_slice %108 {offsets = [0, 0], sizes = [4, 256], strides = [1, 1]} : vector<4x512xf32> to vector<4x256xf32>
    %c4_94 = arith.constant 4 : index
    %c0_95 = arith.constant 0 : index
    %c0_96 = arith.constant 0 : index
    %145 = vector.load %arg8[%c4_94, %c0_95, %c0_96] : memref<9x1x256xf32, #tpu.memory_space<vmem>>, vector<1x1x256xf32>
    %146 = vector.shape_cast %145 : vector<1x1x256xf32> to vector<1x256xf32>
    %147 = vector.broadcast %146 : vector<1x256xf32> to vector<4x256xf32>
    %148 = arith.mulf %144, %147 : vector<4x256xf32>
    %c13 = arith.constant 13 : index
    %c0_97 = arith.constant 0 : index
    %c0_98 = arith.constant 0 : index
    %149 = vector.load %arg4[%c13, %c0_97, %c0_98] : memref<18x4x4xf32, #tpu.memory_space<vmem>>, vector<1x4x4xf32>
    %150 = vector.shape_cast %149 : vector<1x4x4xf32> to vector<4x4xf32>
    %cst_99 = arith.constant dense<0.000000e+00> : vector<4x256xf32>
    %151 = tpu.matmul %150, %148, %cst_99 {dimension_numbers = #tpu.dot_dimension_numbers<[1], [0], [0], [1], [0, 0, 1, 1], [], []>} : vector<4x4xf32>, vector<4x256xf32>, vector<4x256xf32> -> vector<4x256xf32>
    %152 = arith.addf %143, %151 : vector<4x256xf32>
    %153 = vector.extract_strided_slice %108 {offsets = [0, 1], sizes = [4, 256], strides = [1, 1]} : vector<4x512xf32> to vector<4x256xf32>
    %c5_100 = arith.constant 5 : index
    %c0_101 = arith.constant 0 : index
    %c0_102 = arith.constant 0 : index
    %154 = vector.load %arg8[%c5_100, %c0_101, %c0_102] : memref<9x1x256xf32, #tpu.memory_space<vmem>>, vector<1x1x256xf32>
    %155 = vector.shape_cast %154 : vector<1x1x256xf32> to vector<1x256xf32>
    %156 = vector.broadcast %155 : vector<1x256xf32> to vector<4x256xf32>
    %157 = arith.mulf %153, %156 : vector<4x256xf32>
    %c14 = arith.constant 14 : index
    %c0_103 = arith.constant 0 : index
    %c0_104 = arith.constant 0 : index
    %158 = vector.load %arg4[%c14, %c0_103, %c0_104] : memref<18x4x4xf32, #tpu.memory_space<vmem>>, vector<1x4x4xf32>
    %159 = vector.shape_cast %158 : vector<1x4x4xf32> to vector<4x4xf32>
    %cst_105 = arith.constant dense<0.000000e+00> : vector<4x256xf32>
    %160 = tpu.matmul %159, %157, %cst_105 {dimension_numbers = #tpu.dot_dimension_numbers<[1], [0], [0], [1], [0, 0, 1, 1], [], []>} : vector<4x4xf32>, vector<4x256xf32>, vector<4x256xf32> -> vector<4x256xf32>
    %161 = arith.addf %152, %160 : vector<4x256xf32>
    %162 = vector.extract_strided_slice %108 {offsets = [0, 15], sizes = [4, 256], strides = [1, 1]} : vector<4x512xf32> to vector<4x256xf32>
    %c6_106 = arith.constant 6 : index
    %c0_107 = arith.constant 0 : index
    %c0_108 = arith.constant 0 : index
    %163 = vector.load %arg8[%c6_106, %c0_107, %c0_108] : memref<9x1x256xf32, #tpu.memory_space<vmem>>, vector<1x1x256xf32>
    %164 = vector.shape_cast %163 : vector<1x1x256xf32> to vector<1x256xf32>
    %165 = vector.broadcast %164 : vector<1x256xf32> to vector<4x256xf32>
    %166 = arith.mulf %162, %165 : vector<4x256xf32>
    %c15 = arith.constant 15 : index
    %c0_109 = arith.constant 0 : index
    %c0_110 = arith.constant 0 : index
    %167 = vector.load %arg4[%c15, %c0_109, %c0_110] : memref<18x4x4xf32, #tpu.memory_space<vmem>>, vector<1x4x4xf32>
    %168 = vector.shape_cast %167 : vector<1x4x4xf32> to vector<4x4xf32>
    %cst_111 = arith.constant dense<0.000000e+00> : vector<4x256xf32>
    %169 = tpu.matmul %168, %166, %cst_111 {dimension_numbers = #tpu.dot_dimension_numbers<[1], [0], [0], [1], [0, 0, 1, 1], [], []>} : vector<4x4xf32>, vector<4x256xf32>, vector<4x256xf32> -> vector<4x256xf32>
    %170 = arith.addf %161, %169 : vector<4x256xf32>
    %171 = vector.extract_strided_slice %108 {offsets = [0, 16], sizes = [4, 256], strides = [1, 1]} : vector<4x512xf32> to vector<4x256xf32>
    %c7_112 = arith.constant 7 : index
    %c0_113 = arith.constant 0 : index
    %c0_114 = arith.constant 0 : index
    %172 = vector.load %arg8[%c7_112, %c0_113, %c0_114] : memref<9x1x256xf32, #tpu.memory_space<vmem>>, vector<1x1x256xf32>
    %173 = vector.shape_cast %172 : vector<1x1x256xf32> to vector<1x256xf32>
    %174 = vector.broadcast %173 : vector<1x256xf32> to vector<4x256xf32>
    %175 = arith.mulf %171, %174 : vector<4x256xf32>
    %c16 = arith.constant 16 : index
    %c0_115 = arith.constant 0 : index
    %c0_116 = arith.constant 0 : index
    %176 = vector.load %arg4[%c16, %c0_115, %c0_116] : memref<18x4x4xf32, #tpu.memory_space<vmem>>, vector<1x4x4xf32>
    %177 = vector.shape_cast %176 : vector<1x4x4xf32> to vector<4x4xf32>
    %cst_117 = arith.constant dense<0.000000e+00> : vector<4x256xf32>
    %178 = tpu.matmul %177, %175, %cst_117 {dimension_numbers = #tpu.dot_dimension_numbers<[1], [0], [0], [1], [0, 0, 1, 1], [], []>} : vector<4x4xf32>, vector<4x256xf32>, vector<4x256xf32> -> vector<4x256xf32>
    %179 = arith.addf %170, %178 : vector<4x256xf32>
    %180 = vector.extract_strided_slice %108 {offsets = [0, 17], sizes = [4, 256], strides = [1, 1]} : vector<4x512xf32> to vector<4x256xf32>
    %c8_118 = arith.constant 8 : index
    %c0_119 = arith.constant 0 : index
    %c0_120 = arith.constant 0 : index
    %181 = vector.load %arg8[%c8_118, %c0_119, %c0_120] : memref<9x1x256xf32, #tpu.memory_space<vmem>>, vector<1x1x256xf32>
    %182 = vector.shape_cast %181 : vector<1x1x256xf32> to vector<1x256xf32>
    %183 = vector.broadcast %182 : vector<1x256xf32> to vector<4x256xf32>
    %184 = arith.mulf %180, %183 : vector<4x256xf32>
    %c17 = arith.constant 17 : index
    %c0_121 = arith.constant 0 : index
    %c0_122 = arith.constant 0 : index
    %185 = vector.load %arg4[%c17, %c0_121, %c0_122] : memref<18x4x4xf32, #tpu.memory_space<vmem>>, vector<1x4x4xf32>
    %186 = vector.shape_cast %185 : vector<1x4x4xf32> to vector<4x4xf32>
    %cst_123 = arith.constant dense<0.000000e+00> : vector<4x256xf32>
    %187 = tpu.matmul %186, %184, %cst_123 {dimension_numbers = #tpu.dot_dimension_numbers<[1], [0], [0], [1], [0, 0, 1, 1], [], []>} : vector<4x4xf32>, vector<4x256xf32>, vector<4x256xf32> -> vector<4x256xf32>
    %188 = arith.addf %179, %187 : vector<4x256xf32>
    %c1_124 = arith.constant 1 : index
    %c0_125 = arith.constant 0 : index
    %c0_126 = arith.constant 0 : index
    %189 = vector.load %arg5[%c1_124, %c0_125, %c0_126] : memref<2x4x1xf32, #tpu.memory_space<vmem>>, vector<1x4x1xf32>
    %190 = vector.shape_cast %189 : vector<1x4x1xf32> to vector<4x1xf32>
    %191 = vector.broadcast %190 : vector<4x1xf32> to vector<4x256xf32>
    %192 = arith.addf %188, %191 : vector<4x256xf32>
    %cst_127 = arith.constant 0.000000e+00 : f32
    %193 = vector.broadcast %cst_127 : f32 to vector<4x256xf32>
    %194 = arith.subf %193, %192 : vector<4x256xf32>
    %195 = math.exp %194 : vector<4x256xf32>
    %cst_128 = arith.constant 1.000000e+00 : f32
    %196 = vector.broadcast %cst_128 : f32 to vector<4x256xf32>
    %197 = arith.addf %196, %195 : vector<4x256xf32>
    %cst_129 = arith.constant 1.000000e+00 : f32
    %198 = vector.broadcast %cst_129 : f32 to vector<4x256xf32>
    %199 = arith.divf %198, %197 : vector<4x256xf32>
    %200 = arith.mulf %192, %199 : vector<4x256xf32>
    %c0_130 = arith.constant 0 : index
    %c0_131 = arith.constant 0 : index
    %201 = vector.load %arg6[%c0_130, %c0_131] : memref<8x4xf32, #tpu.memory_space<vmem>>, vector<8x4xf32>
    %cst_132 = arith.constant dense<0.000000e+00> : vector<8x256xf32>
    %202 = tpu.matmul %201, %200, %cst_132 {dimension_numbers = #tpu.dot_dimension_numbers<[1], [0], [0], [1], [0, 0, 1, 1], [], []>} : vector<8x4xf32>, vector<4x256xf32>, vector<8x256xf32> -> vector<8x256xf32>
    %c0_133 = arith.constant 0 : index
    %c0_134 = arith.constant 0 : index
    %203 = vector.load %arg7[%c0_133, %c0_134] : memref<8x1xf32, #tpu.memory_space<vmem>>, vector<8x1xf32>
    %204 = vector.broadcast %203 : vector<8x1xf32> to vector<8x256xf32>
    %205 = arith.addf %202, %204 : vector<8x256xf32>
    %cst_135 = arith.constant 0.000000e+00 : f32
    %206 = vector.broadcast %cst_135 : f32 to vector<8x256xf32>
    %207 = arith.subf %206, %205 : vector<8x256xf32>
    %208 = math.exp %207 : vector<8x256xf32>
    %cst_136 = arith.constant 1.000000e+00 : f32
    %209 = vector.broadcast %cst_136 : f32 to vector<8x256xf32>
    %210 = arith.addf %209, %208 : vector<8x256xf32>
    %cst_137 = arith.constant 1.000000e+00 : f32
    %211 = vector.broadcast %cst_137 : f32 to vector<8x256xf32>
    %212 = arith.divf %211, %210 : vector<8x256xf32>
    %213 = arith.mulf %205, %212 : vector<8x256xf32>
    %c0_138 = arith.constant 0 : index
    %c0_139 = arith.constant 0 : index
    %c0_140 = arith.constant 0 : index
    %214 = vector.load %arg9[%c0_138, %c0_139, %c0_140] : memref<1x8x256xf32, #tpu.memory_space<vmem>>, vector<1x8x256xf32>
    %215 = vector.shape_cast %214 : vector<1x8x256xf32> to vector<8x256xf32>
    %216 = vector.shape_cast %213 : vector<8x256xf32> to vector<1x8x256xf32>
    tpu.vector_store %arg9[%c0_138, %c0_139, %c0_140], %216 {strides = array<i32>} : memref<1x8x256xf32, #tpu.memory_space<vmem>>, vector<1x8x256xf32>,
    return
  }
  func.func @transform_0(%arg0: i32) -> (i32, i32, i32) {
    %c0_i32 = arith.constant 0 : i32
    %c0_i32_0 = arith.constant 0 : i32
    %c0_i32_1 = arith.constant 0 : i32
    return %arg0, %c0_i32, %c0_i32_0 : i32, i32, i32
  }
  func.func @transform_1(%arg0: i32) -> (i32, i32) {
    %c0_i32 = arith.constant 0 : i32
    %c0_i32_0 = arith.constant 0 : i32
    %c0_i32_1 = arith.constant 0 : i32
    return %c0_i32, %c0_i32_0 : i32, i32
  }
  func.func @transform_2(%arg0: i32) -> (i32, i32) {
    %c0_i32 = arith.constant 0 : i32
    %c0_i32_0 = arith.constant 0 : i32
    %c0_i32_1 = arith.constant 0 : i32
    return %c0_i32, %c0_i32_0 : i32, i32
  }
  func.func @transform_3(%arg0: i32) -> (i32, i32, i32) {
    %c0_i32 = arith.constant 0 : i32
    %c0_i32_0 = arith.constant 0 : i32
    %c0_i32_1 = arith.constant 0 : i32
    %c0_i32_2 = arith.constant 0 : i32
    return %c0_i32, %c0_i32_0, %c0_i32_1 : i32, i32, i32
  }
  func.func @transform_4(%arg0: i32) -> (i32, i32, i32) {
    %c0_i32 = arith.constant 0 : i32
    %c0_i32_0 = arith.constant 0 : i32
    %c0_i32_1 = arith.constant 0 : i32
    %c0_i32_2 = arith.constant 0 : i32
    return %c0_i32, %c0_i32_0, %c0_i32_1 : i32, i32, i32
  }
  func.func @transform_5(%arg0: i32) -> (i32, i32) {
    %c0_i32 = arith.constant 0 : i32
    %c0_i32_0 = arith.constant 0 : i32
    %c0_i32_1 = arith.constant 0 : i32
    return %c0_i32, %c0_i32_0 : i32, i32
  }
  func.func @transform_6(%arg0: i32) -> (i32, i32) {
    %c0_i32 = arith.constant 0 : i32
    %c0_i32_0 = arith.constant 0 : i32
    %c0_i32_1 = arith.constant 0 : i32
    return %c0_i32, %c0_i32_0 : i32, i32
  }
  func.func @transform_7(%arg0: i32) -> (i32, i32, i32) {
    %c0_i32 = arith.constant 0 : i32
    %c0_i32_0 = arith.constant 0 : i32
    %c0_i32_1 = arith.constant 0 : i32
    %c0_i32_2 = arith.constant 0 : i32
    return %c0_i32, %c0_i32_0, %c0_i32_1 : i32, i32, i32
  }
  func.func @transform_8(%arg0: i32) -> (i32, i32, i32) {
    %c0_i32 = arith.constant 0 : i32
    %c0_i32_0 = arith.constant 0 : i32
    %c0_i32_1 = arith.constant 0 : i32
    return %arg0, %c0_i32, %c0_i32_0 : i32, i32, i32
  }
}

</mosaic_0001>

<bundles_post_ra>
// kernel: tpu_custom_call.1
= control target key start
LH: loop header
LB: loop body
LE: loop exit
PB: predicated region body
PF: predicated region fallthrough
CT: control target
= control target key end

     0   :  { %13 = vsyncpa [#allocation3], 0  ;;  %s3422_s0 = inlined_call_operand.vmem [shape: f32[2,4,256], index: 0, kind: input, shape index: {}]   ;;  %s3423_s1 = inlined_call_operand.vmem [shape: f32[4,4], index: 1, kind: input, shape index: {}]   ;;  %s3424_s2 = inlined_call_operand.vmem [shape: f32[4,1], index: 2, kind: input, shape index: {}]   ;;  %s3425_s3 = inlined_call_operand.vmem [shape: f32[18,4,4], index: 3, kind: input, shape index: {}]   ;;  %s3426_s4 = inlined_call_operand.vmem [shape: f32[2,4,1], index: 4, kind: input, shape index: {}]   ;;  %s3427_s5 = inlined_call_operand.vmem [shape: f32[8,4], index: 5, kind: input, shape index: {}]   ;;  %s3428_s6 = inlined_call_operand.vmem [shape: f32[8,1], index: 6, kind: input, shape index: {}]   ;;  %s3429_s7 = inlined_call_operand.vmem [shape: f32[9,1,256], index: 7, kind: input, shape index: {}]   ;;  %s3430_s8 = inlined_call_operand.hbm [shape: f32[2,8,256], index: 8, kind: output, shape index: {}]  }
   0x1   :  { %15 = vsyncpa [#allocation3 + $0x1], 0  ;;  %s2837_s27 = smov 0   ;;  %s2839_s28 = smov 0  }
   0x2   :  { %s2841_s29 = smov 0   ;;  %s2843_s30 = smov 0  }
   0x3 LB: > { %s2858_s9 = sadd.s32 4294967295, %s2779_s30   ;;  %s2501_s10 = sadd.s32 4294967294, %s2779_s30   ;;  %s2779_s30 = sphi %s2843_s30, %s3436_s30   ;;  %s2775_s29 = sphi %s2841_s29, %s3435_s29   ;;  %s2771_s28 = sphi %s2839_s28, %s3434_s28   ;;  %s2767_s27 = sphi %s2837_s27, %s3433_s27  }
   0x4   : > { %s2862_s11 = sadd.s32 1, %s2779_s30   ;;  %s201_s12 = sadd.s32 1, %s2775_s29 }
   0x5   : > { %s198_s13 = ssub.s32 %s2779_s30, %s2862_s11  ;;  %p211_p0 = scmp.ne.s32.totalorder %s2775_s29, %s2771_s28 }
   0x6   : > { %p199_p1 = scmp.eq.s32.totalorder %s198_s13, 0  ;;  %p212_p2 = scmp.eq.s32.totalorder %s2858_s9, 1 }
   0x7   : > { %p217_p3 = scmp.ne.s32.totalorder %s2771_s28, %s2767_s27  ;;  %p218_p4 = scmp.eq.s32.totalorder %s2501_s10, 1 }
   0x8   : > { %s2873_s14 = scalar_select %p199_p1, %s2775_s29, %s201_s12  }
   0x9   : > { %p2875_p5 = por %p212_p2, %p211_p0  ;;  %p2879_p6 = por %p218_p4, %p217_p3 }
   0xa   : > { %p2504_p7 = scmp.ge.s32.totalorder %s2779_s30, 1  ;;  %p265_p8 = scmp.lt.s32.totalorder %s2779_s30, 3 }
   0xc   : > { %p266_p9 = pnand %p2504_p7, %p265_p8 }
   0xd   : > { %p299_p10 = scmp.lt.s32.totalorder (!%p266_p9), %s2858_s9, 1  ;;  %v410_v0 = vlaneseq (!%p266_p9)  ;;  %v2781_v1 = vmov (!%p266_p9), 0.0   ;;  %v306_v2 = vld [vmem:[%s3424_s2] sm:$0xf] (!%p266_p9)  ;;  %v2782_v3 = vmov (!%p266_p9), 0   ;;  %vm318_vm0 = vcmask (!%p266_p9), 1043456  }
   0xe   : > { %269 = sbr.rel (%p266_p9) target bundleno = 1460 (0x5b4), region = 52  ;;  %387 = vmatprep.mubr.f32.mxu0 (!%p266_p9), %v2781_v1  ;;  %539 = vmatprep.mubr.f32.mxu1 (!%p266_p9), %v2781_v1  ;;  %v2511_v5 = vld [vmem:[%s3429_s7 + $0x2] sm:$0x3] (!%p266_p9)  ;;  %v408_v8 = vld [vmem:[%s3429_s7] sm:$0x3] (!%p266_p9)  ;;  %vm314_vm1 = vcmask (!%p266_p9), 31744  }
   0xf   : > { %2682 = vset.pattern.permute.xlu0 (!%p266_p9), %v2782_v3  ;;  %v411_v4 = vshrl.u32 (!%p266_p9), %v410_v0, 7  ;;  %2683 = vset.pattern.permute.xlu1 (!%p266_p9), %v2782_v3  ;;  %v305_v13 = vld [vmem:[%s3423_s1] sm:$0xf] (!%p266_p9)  ;;  %s2783_s17 = smov (!%p266_p9), 112   ;;  %v2519_v16 = vld [vmem:[%s3429_s7 + $0x4] sm:$0x3] (!%p266_p9) }
  0x10   : > { %309 = vperm.xlu0 (!%p266_p9), %2682, %v306_v2   ;;  %s2784_s20 = smov (!%p266_p9), 111   ;;  %v2524_v19 = vld [vmem:[%s3429_s7 + $0x6] sm:$0x3] (!%p266_p9)  ;;  %s2785_s23 = smov (!%p266_p9), 113   ;;  %v2534_v22 = vld [vmem:[%s3429_s7 + $0xa] sm:$0x3] (!%p266_p9) }
  0x11   : > { %v2895_v6 = vsub.s32 (!%p266_p9), 1, %v411_v4  ;;  %v2897_v7 = vsub.s32 (!%p266_p9), 0, %v411_v4  ;;  %s2786_s26 = smov (!%p266_p9), 127   ;;  %v2539_v25 = vld [vmem:[%s3429_s7 + $0xc] sm:$0x3] (!%p266_p9)  ;;  %s2787_s13 = smov (!%p266_p9), 1  }
  0x12   : > { %v2544_v28 = vld [vmem:[%s3429_s7 + $0xe] sm:$0x3] (!%p266_p9)  ;;  %s2788_s21 = smov (!%p266_p9), 15   ;;  %vm446_vm2 = vcmask (!%p266_p9), 916480   ;;  %v2549_v51 = vld [vmem:[%s3429_s7 + $0x10] sm:$0x3] (!%p266_p9) }
  0x13   : > { %v441_v10 = vrot.slane (!%p266_p9), %v2511_v5, %v2895_v6  ;;  %v437_v11 = vrot.slane (!%p266_p9), %v2511_v5, %v2897_v7  ;;  %v413_v14 = vrot.slane (!%p266_p9), %v408_v8, %v2897_v7  ;;  %v417_v15 = vrot.slane (!%p266_p9), %v408_v8, %v2895_v6  ;;  %s2790_s10 = smov (!%p266_p9), 17   ;;  %s296_s12 = sand.u32 (!%p266_p9), 1, %s2771_s28  }
  0x14   : > { %v642_v17 = vrot.slane (!%p266_p9), %v2519_v16, %v2897_v7  ;;  %v646_v18 = vrot.slane (!%p266_p9), %v2519_v16, %v2895_v6  ;;  %v759_v20 = vrot.slane (!%p266_p9), %v2524_v19, %v2897_v7  ;;  %v763_v21 = vrot.slane (!%p266_p9), %v2524_v19, %v2895_v6  ;;  %s2505_s18 = sshll.u32 (!%p266_p9), %s296_s12, 4 }
  0x15   : > { %s300_s19 = scalar_select %p299_p10, %s2858_s9, 1  ;;  %444 = vrot.lane.b32.xlu1 %v441_v10, %s2783_s17  ;;  %442 = vrot.lane.b32.xlu0 %v437_v11, %s2783_s17  ;;  %v975_v23 = vrot.slane %v2534_v22, %v2897_v7  ;;  %v979_v24 = vrot.slane %v2534_v22, %v2895_v6  ;;  %v1090_v26 = vrot.slane %v2539_v25, %v2897_v7  ;;  %vm422_vm3 = vcmask 908288  }
  0x16   : > { %v1094_v27 = vrot.slane %v2539_v25, %v2895_v6  ;;  %v1205_v29 = vrot.slane %v2544_v28, %v2897_v7  ;;  %v1209_v30 = vrot.slane %v2544_v28, %v2895_v6  ;;  %v1320_v54 = vrot.slane %v2549_v51, %v2897_v7 }
  0x17   : > { %s2599_s22 = sshll.u32 %s300_s19, 3  ;;  %v1324_v59 = vrot.slane %v2549_v51, %v2895_v6  ;;  %vm651_vm4 = vcmask 924672   ;;  %vm768_vm5 = vcmask 1039360   ;;  %vm787_vm6 = vcmask 7168  }
  0x18   : > { %s303_s25 = scalar_lea.vmem %s3422_s0, %s2599_s22  ;;  %s2789_s22 = smov 16   ;;  %vm670_vm7 = vcmask 121856   ;;  %vm465_vm8 = vcmask 130048   ;;  %vm555_vm9 = vcmask 138240  }
  0x19   : > { %v304_v9 = vld [vmem:[%s303_s25] sm:$0xff]  ;;  %418 = vrot.lane.b32.xlu1 %v413_v14, %s2784_s20  ;;  %420 = vrot.lane.b32.xlu0 %v417_v15, %s2784_s20 }
  0x1a   : > { %v313_v12 = vcombine.high %v304_v9, %v304_v9 }
  0x1c   : > { %2508 = vmatprep.subr.msk.mxu0 %vm318_vm0, %v313_v12 }
  0x1d   : > { %2509 = vmatpush1.msk.msra.mxu0 %vm318_vm0, %v304_v9  ;;  %647 = vrot.lane.b32.xlu1 %v642_v17, %s2785_s23 }
  0x1e   : > { %2510 = vmatmul.mubr.msk.f32.vlgmr.msra.gmra.mrb[0].mxu0 %vm314_vm1, %v305_v13  ;;  %649 = vrot.lane.b32.xlu0 %v646_v18, %s2785_s23 }
  0x1f   : > { %1543 = vmatprep.mubr.f32.mxu0 %v2781_v1 }
  0x21   : > { %764 = vrot.lane.b32.xlu1 %v759_v20, %s2786_s26 }
  0x22   : > { %766 = vrot.lane.b32.xlu0 %v763_v21, %s2786_s26 }
  0x25   : > { %980 = vrot.lane.b32.xlu1 %v975_v23, %s2787_s13 }
  0x26   : > { %982 = vrot.lane.b32.xlu0 %v979_v24, %s2787_s13 }
  0x29   : > { %1095 = vrot.lane.b32.xlu1 %v1090_v26, %s2788_s21 }
  0x2a   : > { %1097 = vrot.lane.b32.xlu0 %v1094_v27, %s2788_s21 }
  0x2d   : > { %1210 = vrot.lane.b32.xlu1 %v1205_v29, %s2789_s22 }
  0x2e   : > { %1212 = vrot.lane.b32.xlu0 %v1209_v30, %s2789_s22 }
  0x87   : > { %v2959_v48 = vpop.permute.xlu1 %444 }
  0x8b   : > { %v2977_v55 = vpop.permute.xlu1 %418 }
  0x8f   : > { %v310_v31 = vpop.permute.xlu0 %309  ;;  %v2994_v61 = vpop.permute.xlu1 %647 }
  0x93   : > { %v2961_v49 = vpop.permute.xlu0 %442  ;;  %v3012_v4 = vpop.permute.xlu1 %764 }
  0x94   : > { %v2966_v50 = vsel %vm446_vm2, %v2961_v49, %v2959_v48 }
  0x97   : > { %v2979_v56 = vpop.permute.xlu0 %420  ;;  %v3030_v12 = vpop.permute.xlu1 %980 }
  0x98   : > { %v2985_v57 = vsel %vm422_vm3, %v2977_v55, %v2979_v56 }
  0x9b   : > { %v2996_v62 = vpop.permute.xlu0 %649  ;;  %v3048_v18 = vpop.permute.xlu1 %1095 }
  0x9c   : > { %v3008_v2 = vsel %vm651_vm4, %v2994_v61, %v2996_v62 }
  0x9f   : > { %v3014_v5 = vpop.permute.xlu0 %766  ;;  %v3069_v25 = vpop.permute.xlu1 %1210 }
  0xa0   : > { %v3020_v8 = vsel %vm768_vm5, %v3012_v4, %v3014_v5 }
  0xa3   : > { %v3032_v13 = vpop.permute.xlu0 %982 }
  0xa4   : > { %v3044_v16 = vsel %vm787_vm6, %v3030_v12, %v3032_v13 }
  0xa7   : > { %v3050_v19 = vpop.permute.xlu0 %1097 }
  0xa8   : > { %v3056_v20 = vsel %vm670_vm7, %v3048_v18, %v3050_v19 }
  0xab   : > { %v3071_v26 = vpop.permute.xlu0 %1212 }
  0xac   : > { %v3080_v28 = vsel %vm465_vm8, %v3069_v25, %v3071_v26 }
  0xf1   : > { %v389_v32 = vpop.f32.mrb[0].mxu0 }
  0xf2   : > { %v390_v33 = vadd.f32 %v389_v32, %v310_v31  ;;  %v391_v34 = vpop.f32.mrb[1].mxu0 }
  0xf3   : > { %v392_v35 = vadd.f32 %v391_v34, %v310_v31 }
  0xf4   : > { %v394_v36 = vsub.f32 0.0, %v390_v33 }
  0xf5   : > { %v395_v37 = vsub.f32 0.0, %v392_v35 }
  0xf6   : > { %v396_v38 = vmul.f32 1.442695, %v394_v36 }
  0xf7   : > { %v398_v39 = vmul.f32 1.442695, %v395_v37  ;;  %v2512_v37 = vld [vmem:[%s3425_s3 + $0x4] sm:$0xf] }
  0xf8   : > { %2685 = vpow2.f32 %v396_v38 }
  0xf9   : > { %2687 = vpow2.f32 %v398_v39 }
 0x102   : > { %v2686_v40 = vpop.eup %2685 }
 0x103   : > { %v2688_v41 = vpop.eup %2687  ;;  %v400_v42 = vadd.f32 1.0, %v2686_v40 }
 0x104   : > { %v401_v43 = vadd.f32 1.0, %v2688_v41 }
 0x105   : > { %2689 = vrcp.f32 %v400_v42 }
 0x106   : > { %2691 = vrcp.f32 %v401_v43 }
 0x10f   : > { %v2690_v44 = vpop.eup %2689 }
 0x110   : > { %v2692_v45 = vpop.eup %2691  ;;  %v2955_v46 = vmul.f32 %v2690_v44, %v390_v33 }
 0x111   : > { %v2957_v47 = vmul.f32 %v2692_v45, %v392_v35 }
 0x112   : > { %v452_v53 = vmul.f32 %v2966_v50, %v2955_v46  ;;  %v428_v60 = vmul.f32 %v2985_v57, %v2955_v46  ;;  %v657_v9 = vmul.f32 %v3008_v2, %v2955_v46  ;;  %v774_v10 = vmul.f32 %v3020_v8, %v2955_v46 }
 0x113   : > { %v453_v52 = vmul.f32 %v2959_v48, %v2957_v47  ;;  %v451_v58 = vmul.f32 %v2961_v49, %v2957_v47  ;;  %v427_v63 = vmul.f32 %v2977_v55, %v2957_v47  ;;  %v429_v0 = vmul.f32 %v2979_v56, %v2957_v47 }
 0x114   : > { %461 = vrot.lane.b32.xlu1 %v452_v53, %s2789_s22  ;;  %v658_v3 = vmul.f32 %v2996_v62, %v2957_v47  ;;  %v656_v11 = vmul.f32 %v2994_v61, %v2957_v47  ;;  %v773_v14 = vmul.f32 %v3012_v4, %v2957_v47  ;;  %v775_v15 = vmul.f32 %v3014_v5, %v2957_v47 }
 0x115   : > { %463 = vrot.lane.b32.xlu0 %v453_v52, %s2789_s22  ;;  %v990_v17 = vmul.f32 %v3032_v13, %v2955_v46  ;;  %v989_v21 = vmul.f32 %v3044_v16, %v2957_v47  ;;  %v1104_v22 = vmul.f32 %v3056_v20, %v2957_v47  ;;  %v988_v23 = vmul.f32 %v3030_v12, %v2955_v46  ;;  %v1429_v52 = vld [vmem:[%s3426_s4] sm:$0xf] }
 0x116   : > { %v1103_v24 = vmul.f32 %v3048_v18, %v2955_v46  ;;  %v1105_v27 = vmul.f32 %v3050_v19, %v2955_v46  ;;  %v1220_v29 = vmul.f32 %v3071_v26, %v2955_v46  ;;  %v1219_v30 = vmul.f32 %v3080_v28, %v2957_v47 }
 0x117   : > { %v1218_v31 = vmul.f32 %v3069_v25, %v2955_v46 }
 0x118   : > { %459 = vrot.lane.b32.xlu1 %v451_v58, %s2789_s22 }
 0x119   : > { %1325 = vrot.lane.b32.xlu0 %v1320_v54, %s2790_s10  ;;  %v430_v54 = vld [vmem:[%s3425_s3] sm:$0xf] }
 0x11c   : > { %1327 = vrot.lane.b32.xlu1 %v1324_v59, %s2790_s10 }
 0x11d   : > { %551 = vrot.lane.b32.xlu0 %v428_v60, %s2790_s10 }
 0x120   : > { %553 = vrot.lane.b32.xlu1 %v429_v0, %s2790_s10 }
 0x121   : > { %549 = vrot.lane.b32.xlu0 %v427_v63, %s2790_s10 }
 0x124   : > { %666 = vrot.lane.b32.xlu1 %v657_v9, %s2788_s21 }
 0x125   : > { %668 = vrot.lane.b32.xlu0 %v658_v3, %s2788_s21  ;;  %v2529_v3 = vld [vmem:[%s3429_s7 + $0x8] sm:$0x3] }
 0x128   : > { %664 = vrot.lane.b32.xlu1 %v656_v11, %s2788_s21  ;;  %v2520_v11 = vld [vmem:[%s3425_s3 + $0x8] sm:$0xf] }
 0x129   : > { %783 = vrot.lane.b32.xlu0 %v774_v10, %s2787_s13 }
 0x12c   : > { %785 = vrot.lane.b32.xlu1 %v775_v15, %s2787_s13  ;;  %v3142_v15 = vrot.slane %v2529_v3, %v2895_v6 }
 0x12d   : > { %781 = vrot.lane.b32.xlu0 %v773_v14, %s2787_s13 }
 0x130   : > { %998 = vrot.lane.b32.xlu1 %v989_v21, %s2786_s26 }
 0x131   : > { %1000 = vrot.lane.b32.xlu0 %v990_v17, %s2786_s26 }
 0x134   : > { %996 = vrot.lane.b32.xlu1 %v988_v23, %s2786_s26  ;;  %v884_v23 = vmul.f32 %v3142_v15, %v2957_v47 }
 0x135   : > { %1113 = vrot.lane.b32.xlu0 %v1104_v22, %s2785_s23 }
 0x138   : > { %1115 = vrot.lane.b32.xlu1 %v1105_v27, %s2785_s23 }
 0x139   : > { %1111 = vrot.lane.b32.xlu0 %v1103_v24, %s2785_s23  ;;  %v3153_v24 = vrot.slane %v2529_v3, %v2897_v7 }
 0x13c   : > { %1228 = vrot.lane.b32.xlu1 %v1219_v30, %s2783_s17  ;;  %v883_v30 = vmul.f32 %v3153_v24, %v2955_v46 }
 0x13d   : > { %1230 = vrot.lane.b32.xlu0 %v1220_v29, %s2783_s17  ;;  %v2525_v29 = vld [vmem:[%s3425_s3 + $0xc] sm:$0xf] }
 0x140   : > { %1226 = vrot.lane.b32.xlu1 %v1218_v31, %s2783_s17 }
 0x186   : > { %v462_v33 = vpop.permute.xlu1 %461 }
 0x187   : > { %v464_v32 = vpop.permute.xlu0 %463 }
 0x188   : > { %v467_v34 = vsel %vm465_vm8, %v462_v33, %v464_v32  ;;  %v2530_v32 = vld [vmem:[%s3425_s3 + $0x10] sm:$0xf] }
 0x189   : > { %2513 = vmatprep.subr.msk.mxu1 %vm318_vm0, %v467_v34 }
 0x18a   : > { %v460_v36 = vpop.permute.xlu1 %459 }
 0x18b   : > { %v3094_v35 = vpop.permute.xlu0 %1325  ;;  %v466_v38 = vsel %vm465_vm8, %v460_v36, %v462_v33 }
 0x18c   : > { %2514 = vmatpush1.msk.msra.mxu1 %vm318_vm0, %v466_v38  ;;  %v1333_v58 = vmul.f32 %v3094_v35, %v2955_v46 }
 0x18d   : > { %2515 = vmatmul.mubr.msk.f32.vlgmr.msra.gmra.mrb[0].mxu1 %vm314_vm1, %v2512_v37  ;;  %v2535_v37 = vld [vmem:[%s3425_s3 + $0x14] sm:$0xf] }
 0x18e   : > { %v3102_v40 = vpop.permute.xlu1 %1327  ;;  %629 = vmatprep.mubr.f32.mxu1 %v2781_v1 }
 0x18f   : > { %v552_v39 = vpop.permute.xlu0 %551  ;;  %v3108_v41 = vsel %vm555_vm9, %v3094_v35, %v3102_v40  ;;  %v1335_v42 = vmul.f32 %v3102_v40, %v2955_v46 }
 0x190   : > { %v1334_v43 = vmul.f32 %v3108_v41, %v2957_v47 }
 0x191   : > { %1345 = vrot.lane.b32.xlu1 %v1335_v42, %s2784_s20 }
 0x192   : > { %v554_v45 = vpop.permute.xlu1 %553  ;;  %1343 = vrot.lane.b32.xlu0 %v1334_v43, %s2784_s20 }
 0x193   : > { %v550_v44 = vpop.permute.xlu0 %549  ;;  %v557_v53 = vsel %vm555_vm9, %v552_v39, %v554_v45  ;;  %v2540_v45 = vld [vmem:[%s3425_s3 + $0x18] sm:$0xf] }
 0x194   : > { %v556_v51 = vsel %vm555_vm9, %v550_v44, %v552_v39  ;;  %2516 = vmatprep.subr.msk.mxu1 %vm318_vm0, %v557_v53 }
 0x195   : > { %2517 = vmatpush1.msk.msra.mxu1 %vm318_vm0, %v556_v51  ;;  %1432 = vperm.xlu1 %2683, %v1429_v52   ;;  %v2545_v52 = vld [vmem:[%s3425_s3 + $0x1c] sm:$0xf] }
 0x196   : > { %v667_v60 = vpop.permute.xlu1 %666  ;;  %1341 = vrot.lane.b32.xlu0 %v1333_v58, %s2784_s20  ;;  %2518 = vmatmul.mubr.msk.f32.vlgmr.msra.gmra.mrb[0].mxu1 %vm314_vm1, %v430_v54 }
 0x197   : > { %v669_v59 = vpop.permute.xlu0 %668  ;;  %744 = vmatprep.mubr.f32.mxu1 %v2781_v1 }
 0x198   : > { %v672_v63 = vsel %vm670_vm7, %v667_v60, %v669_v59 }
 0x199   : > { %2521 = vmatprep.subr.msk.mxu1 %vm318_vm0, %v672_v63 }
 0x19a   : > { %v665_v9 = vpop.permute.xlu1 %664 }
 0x19b   : > { %v784_v0 = vpop.permute.xlu0 %783  ;;  %v671_v10 = vsel %vm670_vm7, %v665_v9, %v667_v60  ;;  %v2550_v60 = vld [vmem:[%s3425_s3 + $0x20] sm:$0xf] }
 0x19c   : > { %2522 = vmatpush1.msk.msra.mxu1 %vm318_vm0, %v671_v10 }
 0x19e   : > { %v786_v17 = vpop.permute.xlu1 %785  ;;  %2523 = vmatmul.mubr.msk.f32.vlgmr.msra.gmra.mrb[0].mxu1 %vm314_vm1, %v2520_v11 }
 0x19f   : > { %v782_v14 = vpop.permute.xlu0 %781  ;;  %v789_v22 = vsel %vm787_vm6, %v784_v0, %v786_v17  ;;  %861 = vmatprep.mubr.f32.mxu1 %v2781_v1 }
 0x1a0   : > { %v788_v21 = vsel %vm787_vm6, %v782_v14, %v784_v0  ;;  %2526 = vmatprep.subr.msk.mxu1 %vm318_vm0, %v789_v22 }
 0x1a1   : > { %2527 = vmatpush1.msk.msra.mxu1 %vm318_vm0, %v788_v21 }
 0x1a2   : > { %v999_v6 = vpop.permute.xlu1 %998  ;;  %2531 = vmatprep.subr.msk.mxu1 %vm318_vm0, %v884_v23 }
 0x1a3   : > { %v1001_v27 = vpop.permute.xlu0 %1000 }
 0x1a4   : > { %v1003_v47 = vsel %vm768_vm5, %v999_v6, %v1001_v27 }
 0x1a6   : > { %v997_v31 = vpop.permute.xlu1 %996  ;;  %2528 = vmatmul.mubr.msk.f32.vlgmr.msra.gmra.mrb[0].mxu1 %vm314_vm1, %v2525_v29 }
 0x1a7   : > { %2532 = vmatpush1.msk.msra.mxu1 %vm318_vm0, %v883_v30  ;;  %960 = vmatprep.mubr.f32.mxu1 %v2781_v1  ;;  %v1114_v7 = vpop.permute.xlu0 %1113  ;;  %v1002_v34 = vsel %vm768_vm5, %v997_v31, %v999_v6 }
 0x1a8   : > { %2536 = vmatprep.subr.msk.mxu1 %vm318_vm0, %v1003_v47 }
 0x1aa   : > { %v1116_v33 = vpop.permute.xlu1 %1115 }
 0x1ab   : > { %v1112_v46 = vpop.permute.xlu0 %1111  ;;  %v1118_v36 = vsel %vm651_vm4, %v1114_v7, %v1116_v33 }
 0x1ac   : > { %v1117_v42 = vsel %vm651_vm4, %v1112_v46, %v1114_v7 }
 0x1ae   : > { %2533 = vmatmul.mubr.msk.f32.vlgmr.msra.gmra.mrb[0].mxu1 %vm314_vm1, %v2530_v32  ;;  %v1229_v38 = vpop.permute.xlu1 %1228 }
 0x1af   : > { %2537 = vmatpush1.msk.msra.mxu1 %vm318_vm0, %v1002_v34  ;;  %1075 = vmatprep.mubr.f32.mxu1 %v2781_v1  ;;  %v1231_v39 = vpop.permute.xlu0 %1230 }
 0x1b0   : > { %2541 = vmatprep.subr.msk.mxu1 %vm318_vm0, %v1118_v36  ;;  %v1233_v43 = vsel %vm446_vm2, %v1229_v38, %v1231_v39 }
 0x1b2   : > { %v1227_v44 = vpop.permute.xlu1 %1226 }
 0x1b3   : > { %v1232_v51 = vsel %vm446_vm2, %v1227_v44, %v1229_v38  ;;  %v2555_v38 = vld [vmem:[%s3425_s3 + $0x28] sm:$0xf] }
 0x1b6   : > { %2538 = vmatmul.mubr.msk.f32.vlgmr.msra.gmra.mrb[0].mxu1 %vm314_vm1, %v2535_v37 }
 0x1b7   : > { %2542 = vmatpush1.msk.msra.mxu1 %vm318_vm0, %v1117_v42  ;;  %1190 = vmatprep.mubr.f32.mxu1 %v2781_v1 }
 0x1b8   : > { %2546 = vmatprep.subr.msk.mxu1 %vm318_vm0, %v1233_v43 }
 0x1be   : > { %2543 = vmatmul.mubr.msk.f32.vlgmr.msra.gmra.mrb[0].mxu1 %vm314_vm1, %v2540_v45 }
 0x1bf   : > { %2547 = vmatpush1.msk.msra.mxu1 %vm318_vm0, %v1232_v51  ;;  %1305 = vmatprep.mubr.f32.mxu1 %v2781_v1 }
 0x1c6   : > { %2548 = vmatmul.mubr.msk.f32.vlgmr.msra.gmra.mrb[0].mxu1 %vm314_vm1, %v2545_v52 }
 0x1c7   : > { %1420 = vmatprep.mubr.f32.mxu1 %v2781_v1 }
 0x203   : > { %v1346_v53 = vpop.permute.xlu1 %1345 }
 0x204   : > { %v1344_v54 = vpop.permute.xlu0 %1343 }
 0x205   : > { %v1348_v58 = vsel %vm422_vm3, %v1344_v54, %v1346_v53  ;;  %v2554_v53 = vld [vmem:[%s3425_s3 + $0x24] sm:$0xf] }
 0x206   : > { %2551 = vmatprep.subr.msk.mxu1 %vm318_vm0, %v1348_v58 }
 0x208   : > { %v1342_v59 = vpop.permute.xlu0 %1341 }
 0x209   : > { %v1347_v63 = vsel %vm422_vm3, %v1342_v59, %v1344_v54 }
 0x20a   : > { %2552 = vmatpush1.msk.msra.mxu1 %vm318_vm0, %v1347_v63 }
 0x20b   : > { %2553 = vmatmul.mubr.msk.f32.vlgmr.msra.gmra.mrb[0].mxu1 %vm314_vm1, %v2550_v60 }
 0x20c   : > { %2404 = vmatprep.mubr.f32.mxu1 %v2781_v1 }
 0x214   : > { %v1433_v0 = vpop.permute.xlu1 %1432 }
 0x2de   : > { %v1422_v3 = vpop.f32.mrb[0].mxu1 }
 0x2df   : > { %v1435_v9 = vadd.f32 %v1433_v0, %v1422_v3  ;;  %v1424_v10 = vpop.f32.mrb[1].mxu1  ;;  %v2562_v3 = vld [vmem:[%s3425_s3 + $0x2c] sm:$0xf] }
 0x2e0   : > { %v1436_v11 = vadd.f32 %v1433_v0, %v1424_v10 }
 0x2e1   : > { %v1437_v14 = vsub.f32 0.0, %v1435_v9 }
 0x2e2   : > { %v1438_v17 = vsub.f32 0.0, %v1436_v11 }
 0x2e3   : > { %v1439_v21 = vmul.f32 1.442695, %v1437_v14 }
 0x2e4   : > { %v1441_v22 = vmul.f32 1.442695, %v1438_v17 }
 0x2e5   : > { %2693 = vpow2.f32 %v1439_v21 }
 0x2e6   : > { %2695 = vpow2.f32 %v1441_v22  ;;  %v2566_v22 = vld [vmem:[%s3425_s3 + $0x30] sm:$0xf] }
 0x2ef   : > { %v2694_v23 = vpop.eup %2693 }
 0x2f0   : > { %v2696_v6 = vpop.eup %2695  ;;  %v1443_v27 = vadd.f32 1.0, %v2694_v23 }
 0x2f1   : > { %v1444_v29 = vadd.f32 1.0, %v2696_v6 }
 0x2f2   : > { %2697 = vrcp.f32 %v1443_v27 }
 0x2f3   : > { %2699 = vrcp.f32 %v1444_v29 }
 0x2fc   : > { %v2698_v30 = vpop.eup %2697 }
 0x2fd   : > { %v2700_v31 = vpop.eup %2699  ;;  %v3205_v47 = vmul.f32 %v2698_v30, %v1435_v9  ;;  %v2570_v30 = vld [vmem:[%s3425_s3 + $0x34] sm:$0xf] }
 0x2fe   : > { %v3207_v7 = vmul.f32 %v2700_v31, %v1436_v11 }
 0x2ff   : > { %v1457_v32 = vmul.f32 %v3205_v47, %v2966_v50  ;;  %v1452_v46 = vmul.f32 %v3205_v47, %v2985_v57  ;;  %v1831_v6 = vmul.f32 %v3205_v47, %v3153_v24 }
 0x300   : > { %v1458_v33 = vmul.f32 %v3207_v7, %v2959_v48  ;;  %v1456_v34 = vmul.f32 %v3207_v7, %v2961_v49  ;;  %v1453_v50 = vmul.f32 %v3207_v7, %v2979_v56  ;;  %v1451_v48 = vmul.f32 %v3207_v7, %v2977_v55 }
 0x301   : > { %1466 = vrot.lane.b32.xlu0 %v1457_v32, %s2789_s22  ;;  %v1640_v49 = vmul.f32 %v3205_v47, %v3008_v2  ;;  %v1641_v57 = vmul.f32 %v3207_v7, %v2996_v62  ;;  %v1639_v56 = vmul.f32 %v3207_v7, %v2994_v61  ;;  %v1736_v55 = vmul.f32 %v3205_v47, %v3020_v8  ;;  %v2574_v32 = vld [vmem:[%s3425_s3 + $0x38] sm:$0xf] }
 0x302   : > { %1468 = vrot.lane.b32.xlu1 %v1458_v33, %s2789_s22  ;;  %v1737_v2 = vmul.f32 %v3207_v7, %v3014_v5  ;;  %v1735_v62 = vmul.f32 %v3207_v7, %v3012_v4  ;;  %v1918_v61 = vmul.f32 %v3207_v7, %v3044_v16  ;;  %v1919_v8 = vmul.f32 %v3205_v47, %v3032_v13 }
 0x303   : > { %v1917_v5 = vmul.f32 %v3205_v47, %v3030_v12  ;;  %v2014_v4 = vmul.f32 %v3207_v7, %v3056_v20  ;;  %v2015_v16 = vmul.f32 %v3205_v47, %v3050_v19  ;;  %v2013_v13 = vmul.f32 %v3205_v47, %v3048_v18 }
 0x304   : > { %v2110_v12 = vmul.f32 %v3207_v7, %v3080_v28  ;;  %v2111_v20 = vmul.f32 %v3205_v47, %v3071_v26  ;;  %v2109_v19 = vmul.f32 %v3205_v47, %v3069_v25  ;;  %v2206_v18 = vmul.f32 %v3207_v7, %v3108_v41  ;;  %v2590_v25 = vld [vmem:[%s3426_s4 + $0x4] sm:$0xf] }
 0x305   : > { %1464 = vrot.lane.b32.xlu0 %v1456_v34, %s2789_s22  ;;  %v2207_v28 = vmul.f32 %v3205_v47, %v3102_v40  ;;  %v2205_v26 = vmul.f32 %v3205_v47, %v3094_v35  ;;  %v2325_v41 = vld [vmem:[%s3428_s6] sm:$0xff]  ;;  %v1832_v14 = vmul.f32 %v3207_v7, %v3142_v15 }
 0x306   : > { %1555 = vrot.lane.b32.xlu1 %v1452_v46, %s2790_s10 }
 0x309   : > { %1557 = vrot.lane.b32.xlu0 %v1453_v50, %s2790_s10 }
 0x30a   : > { %1553 = vrot.lane.b32.xlu1 %v1451_v48, %s2790_s10  ;;  %v2578_v48 = vld [vmem:[%s3425_s3 + $0x3c] sm:$0xf]  ;;  %s2791_s10 = smov [#allocation2]  }
 0x30b   : > { %s2721_s19 = sshll.u32 %s2791_s10, 4  ;;  %s2722_s19 = int_to_ptr.vmem [resolvable:$false] %s2721_s19 }
 0x30c   : > { %s2723_s24 = scalar_lea.vmem %s2722_s19, 512 }
 0x30d   : > { %1649 = vrot.lane.b32.xlu0 %v1640_v49, %s2788_s21 }
 0x30e   : > { %1651 = vrot.lane.b32.xlu1 %v1641_v57, %s2788_s21 }
 0x311   : > { %1647 = vrot.lane.b32.xlu0 %v1639_v56, %s2788_s21 }
 0x312   : > { %1745 = vrot.lane.b32.xlu1 %v1736_v55, %s2787_s13 }
 0x315   : > { %1747 = vrot.lane.b32.xlu0 %v1737_v2, %s2787_s13 }
 0x316   : > { %1743 = vrot.lane.b32.xlu1 %v1735_v62, %s2787_s13  ;;  %v2582_v62 = vld [vmem:[%s3425_s3 + $0x40] sm:$0xf] }
 0x319   : > { %1927 = vrot.lane.b32.xlu0 %v1918_v61, %s2786_s26 }
 0x31a   : > { %1929 = vrot.lane.b32.xlu1 %v1919_v8, %s2786_s26  ;;  %v2586_v8 = vld [vmem:[%s3425_s3 + $0x44] sm:$0xf] }
 0x31d   : > { %1925 = vrot.lane.b32.xlu0 %v1917_v5, %s2786_s26  ;;  %s298_s26 = scalar_lea.vmem [#allocation2], %s2505_s18 }
 0x31e   : > { %2023 = vrot.lane.b32.xlu1 %v2014_v4, %s2785_s23  ;;  %s2442_s13 = sshll.u32 %s298_s26, 4  ;;  %s3382_s13 = int_to_ptr.vmem [resolvable:$true] %s2442_s13 }
 0x31f   : > { %p2724_p0 = scmp.lt.s32.totalorder %s3382_s13, %s2722_s19 }
 0x321   : > { %2025 = vrot.lane.b32.xlu0 %v2015_v16, %s2785_s23 }
 0x322   : > { %2021 = vrot.lane.b32.xlu1 %v2013_v13, %s2785_s23  ;;  %s2600_s23 = sshll.u32 %s2858_s9, 8  ;;  %s2717_s9 = scalar_lea.vmem %s3382_s13, 256 }
 0x323   : > { %s3380_s22 = scalar_lea.hbm %s3430_s8, %s2600_s23  ;;  %p2718_p11 = scmp.ne.s32.totalorder %s3382_s13, %s2717_s9 }
 0x324   : > { %p2725_p1 = scmp.lt.s32.totalorder %s2723_s24, %s2717_s9 }
 0x325   : > { %2119 = vrot.lane.b32.xlu0 %v2110_v12, %s2783_s17  ;;  %p2719_p12 = pnand %p2718_p11, %p2875_p5 }
 0x326   : > { %2121 = vrot.lane.b32.xlu1 %v2111_v20, %s2783_s17  ;;  %p2726_p2 = por %p2725_p1, %p2724_p0 }
 0x327   : > { %p2720_p13 = pneg %p2719_p12 }
 0x329   : > { %2117 = vrot.lane.b32.xlu0 %v2109_v19, %s2783_s17  ;;  %p2727_p3 = pnand %p2726_p2, %p2720_p13 }
 0x32a   : > { %2215 = vrot.lane.b32.xlu1 %v2206_v18, %s2784_s20 }
 0x32d   : > { %2217 = vrot.lane.b32.xlu0 %v2207_v28, %s2784_s20 }
 0x32e   : > { %2213 = vrot.lane.b32.xlu1 %v2205_v26, %s2784_s20  ;;  %s2428_s20 = scalar_lea.sflag [#allocation3], %s296_s12 }
 0x331   : > { %2305 = vperm.xlu0 %2682, %v2590_v25  }
 0x332   : > { %2328 = vperm.xlu1 %2683, %v2325_v41  }
 0x373   : > { %v1467_v36 = vpop.permute.xlu0 %1466 }
 0x374   : > { %v1469_v37 = vpop.permute.xlu1 %1468 }
 0x375   : > { %v1471_v40 = vsel %vm465_vm8, %v1467_v36, %v1469_v37 }
 0x376   : > { %2556 = vmatprep.subr.msk.mxu0 %vm318_vm0, %v1471_v40 }
 0x377   : > { %v1465_v35 = vpop.permute.xlu0 %1464 }
 0x378   : > { %v1470_v39 = vsel %vm465_vm8, %v1465_v35, %v1467_v36  ;;  %v1556_v42 = vpop.permute.xlu1 %1555 }
 0x379   : > { %2557 = vmatpush1.msk.msra.mxu0 %vm318_vm0, %v1470_v39 }
 0x37a   : > { %2558 = vmatmul.mubr.msk.f32.vlgmr.msra.gmra.mrb[2].mxu0 %vm314_vm1, %v2555_v38  ;;  %v2324_v38 = vld [vmem:[%s3427_s5] sm:$0xff] }
 0x37b   : > { %v1558_v43 = vpop.permute.xlu0 %1557  ;;  %1632 = vmatprep.mubr.f32.mxu0 %v2781_v1 }
 0x37c   : > { %v1560_v44 = vsel %vm555_vm9, %v1556_v42, %v1558_v43  ;;  %v1554_v45 = vpop.permute.xlu1 %1553 }
 0x37d   : > { %v1559_v51 = vsel %vm555_vm9, %v1554_v45, %v1556_v42  ;;  %2559 = vmatprep.subr.msk.mxu0 %vm318_vm0, %v1560_v44 }
 0x37e   : > { %2560 = vmatpush1.msk.msra.mxu0 %vm318_vm0, %v1559_v51 }
 0x37f   : > { %v1650_v52 = vpop.permute.xlu0 %1649 }
 0x380   : > { %v1652_v54 = vpop.permute.xlu1 %1651 }
 0x381   : > { %v1654_v58 = vsel %vm670_vm7, %v1650_v52, %v1652_v54 }
 0x382   : > { %2561 = vmatmul.mubr.msk.f32.vlgmr.msra.gmra.mrb[2].mxu0 %vm314_vm1, %v2554_v53  ;;  %2563 = vmatprep.subr.msk.mxu0 %vm318_vm0, %v1654_v58 }
 0x383   : > { %v1648_v59 = vpop.permute.xlu0 %1647  ;;  %1726 = vmatprep.mubr.f32.mxu0 %v2781_v1 }
 0x384   : > { %v1653_v60 = vsel %vm670_vm7, %v1648_v59, %v1650_v52  ;;  %v1746_v63 = vpop.permute.xlu1 %1745 }
 0x385   : > { %2564 = vmatpush1.msk.msra.mxu0 %vm318_vm0, %v1653_v60 }
 0x387   : > { %v1748_v0 = vpop.permute.xlu0 %1747 }
 0x388   : > { %v1750_v9 = vsel %vm787_vm6, %v1746_v63, %v1748_v0  ;;  %v1744_v10 = vpop.permute.xlu1 %1743 }
 0x389   : > { %v1749_v11 = vsel %vm787_vm6, %v1744_v10, %v1746_v63  ;;  %2567 = vmatprep.subr.msk.mxu0 %vm318_vm0, %v1750_v9 }
 0x38a   : > { %2565 = vmatmul.mubr.msk.f32.vlgmr.msra.gmra.mrb[2].mxu0 %vm314_vm1, %v2562_v3 }
 0x38b   : > { %2568 = vmatpush1.msk.msra.mxu0 %vm318_vm0, %v1749_v11  ;;  %v1928_v17 = vpop.permute.xlu0 %1927  ;;  %1822 = vmatprep.mubr.f32.mxu0 %v2781_v1 }
 0x38c   : > { %2571 = vmatprep.subr.msk.mxu0 %vm318_vm0, %v1832_v14  ;;  %v1930_v21 = vpop.permute.xlu1 %1929 }
 0x38d   : > { %v1932_v15 = vsel %vm768_vm5, %v1928_v17, %v1930_v21 }
 0x38f   : > { %v1926_v23 = vpop.permute.xlu0 %1925 }
 0x390   : > { %v2024_v27 = vpop.permute.xlu1 %2023  ;;  %v1931_v31 = vsel %vm768_vm5, %v1926_v23, %v1928_v17 }
 0x392   : > { %2569 = vmatmul.mubr.msk.f32.vlgmr.msra.gmra.mrb[2].mxu0 %vm314_vm1, %v2566_v22 }
 0x393   : > { %2572 = vmatpush1.msk.msra.mxu0 %vm318_vm0, %v1831_v6  ;;  %1908 = vmatprep.mubr.f32.mxu0 %v2781_v1  ;;  %v2026_v29 = vpop.permute.xlu0 %2025 }
 0x394   : > { %2575 = vmatprep.subr.msk.mxu0 %vm318_vm0, %v1932_v15  ;;  %v2022_v7 = vpop.permute.xlu1 %2021  ;;  %v2028_v24 = vsel %vm651_vm4, %v2024_v27, %v2026_v29 }
 0x395   : > { %v2027_v34 = vsel %vm651_vm4, %v2022_v7, %v2024_v27 }
 0x397   : > { %v2120_v47 = vpop.permute.xlu0 %2119 }
 0x398   : > { %v2122_v33 = vpop.permute.xlu1 %2121 }
 0x399   : > { %v2124_v50 = vsel %vm446_vm2, %v2120_v47, %v2122_v33 }
 0x39a   : > { %2573 = vmatmul.mubr.msk.f32.vlgmr.msra.gmra.mrb[2].mxu0 %vm314_vm1, %v2570_v30 }
 0x39b   : > { %2576 = vmatpush1.msk.msra.mxu0 %vm318_vm0, %v1931_v31  ;;  %2004 = vmatprep.mubr.f32.mxu0 %v2781_v1  ;;  %v2118_v46 = vpop.permute.xlu0 %2117 }
 0x39c   : > { %2579 = vmatprep.subr.msk.mxu0 %vm318_vm0, %v2028_v24  ;;  %v2216_v57 = vpop.permute.xlu1 %2215  ;;  %v2123_v56 = vsel %vm446_vm2, %v2118_v46, %v2120_v47 }
 0x39f   : > { %v2218_v49 = vpop.permute.xlu0 %2217 }
 0x3a0   : > { %v2220_v55 = vsel %vm422_vm3, %v2216_v57, %v2218_v49  ;;  %v2214_v2 = vpop.permute.xlu1 %2213 }
 0x3a1   : > { %v2219_v61 = vsel %vm422_vm3, %v2214_v2, %v2216_v57 }
 0x3a2   : > { %2577 = vmatmul.mubr.msk.f32.vlgmr.msra.gmra.mrb[2].mxu0 %vm314_vm1, %v2574_v32 }
 0x3a3   : > { %2580 = vmatpush1.msk.msra.mxu0 %vm318_vm0, %v2027_v34  ;;  %2100 = vmatprep.mubr.f32.mxu0 %v2781_v1 }
 0x3a4   : > { %2583 = vmatprep.subr.msk.mxu0 %vm318_vm0, %v2124_v50 }
 0x3aa   : > { %2581 = vmatmul.mubr.msk.f32.vlgmr.msra.gmra.mrb[2].mxu0 %vm314_vm1, %v2578_v48 }
 0x3ab   : > { %2584 = vmatpush1.msk.msra.mxu0 %vm318_vm0, %v2123_v56  ;;  %2196 = vmatprep.mubr.f32.mxu0 %v2781_v1 }
 0x3ac   : > { %2587 = vmatprep.subr.msk.mxu0 %vm318_vm0, %v2220_v55 }
 0x3b0   : > { %v2306_v5 = vpop.permute.xlu0 %2305 }
 0x3b1   : > { %v2329_v39 = vpop.permute.xlu1 %2328 }
 0x3b2   : > { %2585 = vmatmul.mubr.msk.f32.vlgmr.msra.gmra.mrb[2].mxu0 %vm314_vm1, %v2582_v62 }
 0x3b3   : > { %2588 = vmatpush1.msk.msra.mxu0 %vm318_vm0, %v2219_v61  ;;  %2292 = vmatprep.mubr.f32.mxu0 %v2781_v1 }
 0x3ba   : > { %2589 = vmatmul.mubr.msk.f32.vlgmr.msra.gmra.mrb[2].mxu0 %vm314_vm1, %v2586_v8 }
 0x48d   : > { %v2294_v4 = vpop.f32.mrb[2].mxu0 }
 0x48e   : > { %v2308_v16 = vadd.f32 %v2306_v5, %v2294_v4  ;;  %v2296_v13 = vpop.f32.mrb[3].mxu0 }
 0x48f   : > { %v2309_v12 = vadd.f32 %v2306_v5, %v2296_v13 }
 0x490   : > { %v2310_v20 = vsub.f32 0.0, %v2308_v16 }
 0x491   : > { %v2311_v19 = vsub.f32 0.0, %v2309_v12 }
 0x492   : > { %v2312_v18 = vmul.f32 1.442695, %v2310_v20 }
 0x493   : > { %v2314_v28 = vmul.f32 1.442695, %v2311_v19 }
 0x494   : > { %2701 = vpow2.f32 %v2312_v18 }
 0x495   : > { %2703 = vpow2.f32 %v2314_v28 }
 0x49e   : > { %v2702_v26 = vpop.eup %2701 }
 0x49f   : > { %v2704_v25 = vpop.eup %2703  ;;  %v2316_v1 = vadd.f32 1.0, %v2702_v26 }
 0x4a0   : > { %v2317_v41 = vadd.f32 1.0, %v2704_v25 }
 0x4a1   : > { %2705 = vrcp.f32 %v2316_v1 }
 0x4a2   : > { %2707 = vrcp.f32 %v2317_v41 }
 0x4ab   : > { %v2706_v36 = vpop.eup %2705 }
 0x4ac   : > { %v2708_v37 = vpop.eup %2707  ;;  %v2322_v35 = vmul.f32 %v2706_v36, %v2308_v16 }
 0x4ad   : > { %v2323_v40 = vmul.f32 %v2708_v37, %v2309_v12 }
 0x4af   : > { %2591 = vmatprep.subr.msk.mxu1 %vm318_vm0, %v2323_v40 }
 0x4b0   : > { %2592 = vmatpush1.msk.msra.mxu1 %vm318_vm0, %v2322_v35 }
 0x4b1   : > { %2593 = vmatmul.mubr.msk.f32.vlgmr.msra.gmra.mrb[2].mxu1 %vm314_vm1, %v2324_v38 }
 0x584   : > { %v2406_v42 = vpop.f32.mrb[2].mxu1 }
 0x585   : > { %v2407_v43 = vadd.f32 %v2406_v42, %v2329_v39  ;;  %v2408_v44 = vpop.f32.mrb[3].mxu1 }
 0x586   : > { %v2409_v45 = vadd.f32 %v2408_v44, %v2329_v39 }
 0x587   : > { %v2411_v51 = vsub.f32 0.0, %v2407_v43 }
 0x588   : > { %v2412_v52 = vsub.f32 0.0, %v2409_v45 }
 0x589   : > { %v2413_v53 = vmul.f32 1.442695, %v2411_v51 }
 0x58a   : > { %v2415_v54 = vmul.f32 1.442695, %v2412_v52 }
 0x58b   : > { %2709 = vpow2.f32 %v2413_v53 }
 0x58c   : > { %2711 = vpow2.f32 %v2415_v54 }
 0x595   : > { %v2710_v58 = vpop.eup %2709 }
 0x596   : > { %v2712_v59 = vpop.eup %2711  ;;  %v2417_v60 = vadd.f32 1.0, %v2710_v58 }
 0x597   : > { %v2418_v63 = vadd.f32 1.0, %v2712_v59 }
 0x598   : > { %2713 = vrcp.f32 %v2417_v60 }
 0x599   : > { %2715 = vrcp.f32 %v2418_v63 }
 0x5a2   : > { %v2714_v0 = vpop.eup %2713 }
 0x5a3   : > { %v2716_v3 = vpop.eup %2715  ;;  %v2423_v9 = vmul.f32 %v2714_v0, %v2407_v43 }
 0x5a4   : > { %v2424_v10 = vmul.f32 %v2716_v3, %v2409_v45 }
 0x5a5   : > { %2425 = vst [vmem:[%s298_s26] sm:$0xff] %v2423_v9 }
 0x5a6   : > { %2426 = vst [vmem:[%s298_s26 + $0x8] sm:$0xff] %v2424_v10 }
 0x5a7   : > { %2730 = shalt.err (!%p2727_p3)
}
 0x5a8   : > { %s2731_s25 = scalar_lea.hbm %s3380_s22, 256  ;;  %s2735_s23 = scalar_lea.hbm %s3430_s8, 512 }
 0x5a9   : > { %p2732_p4 = scmp.ne.s32.totalorder %s3380_s22, %s2731_s25  ;;  %p2736_p9 = scmp.lt.u32.totalorder %s3380_s22, %s3430_s8 }
 0x5aa   : > { %p2737_p10 = scmp.lt.u32.totalorder %s2735_s23, %s2731_s25  ;;  %p2739_p12 = scmp.lt.u32.totalorder %s2731_s25, %s3380_s22 }
 0x5ab   : > { %p2733_p7 = pnand %p2732_p4, %p2875_p5 }
 0x5ac   : > { %p2738_p11 = por %p2737_p10, %p2736_p9 }
 0x5ad   : > { %p2734_p8 = pneg %p2733_p7 }
 0x5ae   : > { %p2740_p13 = por %p2739_p12, %p2738_p11 }
 0x5b0   : > { %p2741_p0 = pnand %p2740_p13, %p2734_p8 }
 0x5b2   : > { %2744 = shalt.err (!%p2741_p0)
}
 0x5b3   : > { %2633 = dma.vmem_to_hbm [thread:$0]  (%p2875_p5), %s3382_s13, 256, %s3380_s22, %s2428_s20  }
 0x5b4 PF: > { %p2639_p1 = scmp.ge.s32.totalorder %s2779_s30, 2  ;;  %s2454_s17 = sand.u32 1, %s2767_s27  }
 0x5b5   : > { %s2455_s9 = scalar_lea.sflag [#allocation3], %s2454_s17 }
 0x5b6   : > { %p2636_p2 = pnand %p2639_p1, %p2879_p6 }
 0x5b8   : > { %2762 = dma.done.wait (!%p2636_p2), %s2455_s9, 256  }
 0x5b9   : > { %2764 = vsyncadd (!%p2636_p2), %s2455_s9, 4294967040  ;;  %p18_p3 = scmp.ge.s32.totalorder %s2862_s11, 4   ;;  %s3433_s27 = smov %s2771_s28 }
 0x5ba   : > { %s3434_s28 = smov %s2775_s29  ;;  %s3435_s29 = smov %s2873_s14 }
 0x5bb   : > { %s3436_s30 = smov %s2862_s11  ;;  %20 = sbr.rel (!%p18_p3) target bundleno = 3 (0x3), region = 113 }
 0x5c2   :  { %2460 = vsyncpa [#allocation3], 1 }
 0x5c3   :  { %2462 = vsyncpa [#allocation3 + $0x1], 1 }

</bundles_post_ra>
